<compile_context>
chip_gen: v5e
topology: v5e:2x2
jax: 0.10.0
libtpu: 0.0.40
codegen_flags: <defaults>
</compile_context>

<pallas_src>
import jax
import jax.numpy as jnp
from jax.experimental import pallas as pl
from jax.experimental.pallas import tpu as pltpu

HIDDEN = 128                     # hidden width (fixed by the PyTorch module)
BOTTLENECK = 32                  # encoder output width (fixed by the module)
FUSED_N = 2 * HIDDEN             # fused bottleneck width: [enc(pad 128) | h2(128)]
_VMEM_BLOCK_BUDGET = 26 << 20    # target double-buffered pipeline footprint


def _round_up(n: int, m: int) -> int:
    return ((n + m - 1) // m) * m


def _pad2(a, rows, cols):
    pr, pc = rows - a.shape[0], cols - a.shape[1]
    if pr == 0 and pc == 0:
        return a
    return jnp.pad(a, ((0, pr), (0, pc)))


def _vmem_footprint_bytes(bt, dim_p, x_isz, dec_isz, cdt_isz):
    """Rough per-kernel VMEM footprint: double-buffered I/O blocks + weights
    (double-buffered, since we do not rely on pl.Buffered(1)) + f32 live temps."""
    io_blocks = 2 * bt * dim_p * (x_isz + dec_isz) + 2 * bt * BOTTLENECK * 4
    weights = 2 * cdt_isz * (dim_p * HIDDEN + HIDDEN * FUSED_N + HIDDEN * dim_p)
    biases = 2 * 4 * 8 * (HIDDEN + FUSED_N + dim_p)
    temps = bt * 4 * (HIDDEN + FUSED_N + HIDDEN + dim_p)   # h1, y, h2, logits (f32)
    return io_blocks + weights + biases + temps


def autoencoder_kernel(x_ref,
                       w1_ref, b1_ref,   # Linear(dim -> 128)
                       wf_ref, bf_ref,   # fused: [pad(w2) | w2@w3], [pad(b2) | b2@w3+b3]
                       w4_ref, b4_ref,   # Linear(128 -> dim)
                       enc_ref, dec_ref):
    cdt = w1_ref.dtype                      # MXU input dtype (bf16 fast / f32 check)

    x = x_ref[...].astype(cdt)              # x arrives f32 on the aligned path
    h1 = jnp.tanh(
        jnp.dot(x, w1_ref[...], preferred_element_type=jnp.float32) + b1_ref[...]
    )
    h1c = h1.astype(cdt)

    # One N=256 matmul produces both the encoder output (cols 0..31; 32..127 are
    # zero-padded) and the pre-tanh decoder hidden (cols 128..255), using the
    # fused identity tanh((h1@w2+b2)@w3+b3) == tanh(h1@(w2@w3) + (b2@w3+b3)).
    y = jnp.dot(h1c, wf_ref[...], preferred_element_type=jnp.float32) + bf_ref[...]
    enc_ref[...] = y[:, :BOTTLENECK].astype(enc_ref.dtype)

    h2 = jnp.tanh(y[:, HIDDEN:])
    logits = (
        jnp.dot(h2.astype(cdt), w4_ref[...], preferred_element_type=jnp.float32)
        + b4_ref[...]
    )
    # sigmoid(z) == 0.5 * (tanh(0.5*z) + 1): a single EUP op over the widest tile.
    dec_ref[...] = (0.5 * (jnp.tanh(0.5 * logits) + 1.0)).astype(dec_ref.dtype)


def autoencoder_forward(x, params, *, batch_tile=512, use_bf16=True,
                        dec_dtype=jnp.float32):
    """x: (B, dim) float32. params: dict w1,b1,...,w4,b4 (weights as (in,out)).

    Returns (enc (B,32) f32, dec (B,dim) dec_dtype), matching PyTorch forward.
    Set dec_dtype=jnp.bfloat16 to halve the largest HBM write if the consumer
    tolerates it (default f32 preserves the original semantics exactly)."""
    B, dim = x.shape
    f32 = jnp.float32
    cdt = jnp.bfloat16 if use_bf16 else f32

    w1, b1 = params["w1"].astype(f32), params["b1"].astype(f32)
    w2, b2 = params["w2"].astype(f32), params["b2"].astype(f32)
    w3, b3 = params["w3"].astype(f32), params["b3"].astype(f32)
    w4, b4 = params["w4"].astype(f32), params["b4"].astype(f32)

    # Feature dims lane-dense (multiple of 128).
    # TODO(synk): for extremely large dim (dim_p >> 8192) add a second grid axis
    # tiling w4/b4/dec over N so block sizes stop scaling with dim (v7x VMEM).
    dim_p = max(_round_up(dim, 128), 128)

    # ---- batch tile selection -------------------------------------------------
    granule = 16 if use_bf16 else 8          # bf16 packs 2 rows/sublane
    bt = max(granule, _round_up(min(batch_tile, max(B, 1)), granule))
    if B > granule:                          # >=2 tiles -> both v7x TCs get work
        bt = min(bt, _round_up(-(-B // 2), granule))
    dec_isz = jnp.dtype(dec_dtype).itemsize
    cdt_isz = jnp.dtype(cdt).itemsize
    while bt > granule and _vmem_footprint_bytes(bt, dim_p, 4, dec_isz, cdt_isz) \
            > _VMEM_BLOCK_BUDGET:
        bt = max(granule, _round_up(bt // 2, granule))
    B_p = _round_up(B, bt)
    grid = (B_p // bt,)

    # ---- parameters (fused bottleneck precomputed once; tiny host matmul) -----
    w1_p = _pad2(w1, dim_p, HIDDEN).astype(cdt)
    wf = jnp.concatenate([_pad2(w2, HIDDEN, HIDDEN), w2 @ w3], axis=1).astype(cdt)
    bf = jnp.concatenate([_pad2(b2, 1, HIDDEN), b2 @ w3 + b3], axis=1)   # f32
    w4_p = _pad2(w4, HIDDEN, dim_p).astype(cdt)
    b4_p = _pad2(b4, 1, dim_p)

    # ---- input: zero-copy on aligned shapes; pad (+narrow cast) only if ragged -
    if B_p == B and dim_p == dim:
        x_in = x                              # kernel casts to bf16 internally
    else:
        x_in = _pad2(x.astype(cdt), B_p, dim_p)

    out_shapes = (
        jax.ShapeDtypeStruct((B_p, BOTTLENECK), f32),     # encoder output, unpadded
        jax.ShapeDtypeStruct((B_p, dim_p), dec_dtype),    # decoder output
    )

    def x_map(i):
        return (i, 0)

    def w_map(i):
        return (0, 0)   # grid-invariant weights: same block every step

    in_specs = [
        pl.BlockSpec((bt, dim_p), x_map),                 # x tile (pipelined)
        pl.BlockSpec((dim_p, HIDDEN), w_map),             # w1
        pl.BlockSpec((1, HIDDEN), w_map),                 # b1
        pl.BlockSpec((HIDDEN, FUSED_N), w_map),           # fused w2|w23
        pl.BlockSpec((1, FUSED_N), w_map),                # fused b2|b23
        pl.BlockSpec((HIDDEN, dim_p), w_map),             # w4
        pl.BlockSpec((1, dim_p), w_map),                  # b4
    ]
    out_specs = (
        pl.BlockSpec((bt, BOTTLENECK), x_map),
        pl.BlockSpec((bt, dim_p), x_map),
    )

    footprint = _vmem_footprint_bytes(bt, dim_p, x_in.dtype.itemsize, dec_isz, cdt_isz)
    vmem_limit = int(min(max(footprint + (6 << 20), 32 << 20), 48 << 20))

    flops = 2 * B_p * (dim_p * HIDDEN + HIDDEN * FUSED_N + HIDDEN * dim_p)
    transcendentals = B_p * (HIDDEN + HIDDEN + dim_p)
    bytes_accessed = int(
        x_in.size * x_in.dtype.itemsize
        + (w1_p.size + wf.size + w4_p.size) * cdt_isz
        + (b1.size + bf.size + b4_p.size) * 4
        + B_p * BOTTLENECK * 4
        + B_p * dim_p * dec_isz
    )

    fn = pl.pallas_call(
        autoencoder_kernel,
        out_shape=out_shapes,
        grid=grid,
        in_specs=in_specs,
        out_specs=out_specs,
        compiler_params=pltpu.CompilerParams(
            dimension_semantics=("parallel",),
            vmem_limit_bytes=vmem_limit,
        ),
        cost_estimate=pl.CostEstimate(
            flops=flops,
            transcendentals=transcendentals,
            bytes_accessed=bytes_accessed,
        ),
    )
    enc_p, dec_p = fn(x_in, w1_p, b1, wf, bf, w4_p, b4_p)

    enc = enc_p if B_p == B else enc_p[:B]
    dec = dec_p if (B_p == B and dim_p == dim) else dec_p[:B, :dim]
    return enc, dec


def init_params(key, dim, hidden=HIDDEN, bottleneck=BOTTLENECK):
    """PyTorch-Linear-style init (uniform +/- 1/sqrt(fan_in)).
    Weights stored as (in_features, out_features); biases as (1, out_features)."""
    ks = jax.random.split(key, 8)

    def lin(kw, kb, fan_in, fan_out):
        bound = 1.0 / jnp.sqrt(fan_in)
        w = jax.random.uniform(kw, (fan_in, fan_out), jnp.float32, -bound, bound)
        b = jax.random.uniform(kb, (1, fan_out), jnp.float32, -bound, bound)
        return w, b

    w1, b1 = lin(ks[0], ks[1], dim, hidden)
    w2, b2 = lin(ks[2], ks[3], hidden, bottleneck)
    w3, b3 = lin(ks[4], ks[5], bottleneck, hidden)
    w4, b4 = lin(ks[6], ks[7], hidden, dim)
    return {"w1": w1, "b1": b1, "w2": w2, "b2": b2,
            "w3": w3, "b3": b3, "w4": w4, "b4": b4}


def reference_forward(x, p):
    """Pure-JAX unfused reference (mirrors the PyTorch module exactly)."""
    h1 = jnp.tanh(x @ p["w1"] + p["b1"])
    enc = h1 @ p["w2"] + p["b2"]
    h2 = jnp.tanh(enc @ p["w3"] + p["b3"])
    dec = jax.nn.sigmoid(h2 @ p["w4"] + p["b4"])
    return enc, dec


if __name__ == "__main__":
    key = jax.random.PRNGKey(0)
    k_x, k_p = jax.random.split(key)

    # Aligned fast path: dim multiple of 128, batch splits into 2 parallel tiles.
    batch, dim = 256, 256
    x = jax.random.uniform(k_x, (batch, dim), jnp.float32)   # sigmoid AE inputs in [0,1]
    params = init_params(k_p, dim)
    enc_ref, dec_ref = reference_forward(x, params)

    # bf16 MXU inputs, f32 accumulation (fast path).
    enc, dec = autoencoder_forward(x, params, use_bf16=True)
    enc, dec = jax.block_until_ready((enc, dec))
    assert enc.shape == (batch, BOTTLENECK) and dec.shape == (batch, dim)
    assert jnp.allclose(enc, enc_ref, atol=5e-2, rtol=5e-2)
    assert jnp.allclose(dec, dec_ref, atol=5e-2, rtol=5e-2)

    # Full f32 validation path.
    enc32, dec32 = autoencoder_forward(x, params, use_bf16=False)
    enc32, dec32 = jax.block_until_ready((enc32, dec32))
    assert jnp.allclose(enc32, enc_ref, atol=1e-3, rtol=1e-3)
    assert jnp.allclose(dec32, dec_ref, atol=1e-3, rtol=1e-3)

    # Odd, non-aligned shape exercises the (copy-unavoidable) padded path.
    b_odd, d_odd = 37, 100
    x2 = jax.random.uniform(jax.random.PRNGKey(1), (b_odd, d_odd), jnp.float32)
    p2 = init_params(jax.random.PRNGKey(2), d_odd)
    e2, o2 = autoencoder_forward(x2, p2, use_bf16=False)
    e2, o2 = jax.block_until_ready((e2, o2))
    e2_ref, o2_ref = reference_forward(x2, p2)
    assert e2.shape == (b_odd, BOTTLENECK) and o2.shape == (b_odd, d_odd)
    assert jnp.allclose(e2, e2_ref, atol=1e-3, rtol=1e-3)
    assert jnp.allclose(o2, o2_ref, atol=1e-3, rtol=1e-3)

    print("KERNEL_OK")
</pallas_src>

<mosaic_0001>
module attributes {stable_mosaic.version = 11 : i64} {
  func.func @autoencoder_kernel(%arg0: i32, %arg1: memref<128x256xf32, #tpu.memory_space<vmem>>, %arg2: memref<256x128xbf16, #tpu.memory_space<vmem>>, %arg3: memref<1x128xf32, #tpu.memory_space<vmem>>, %arg4: memref<128x256xbf16, #tpu.memory_space<vmem>>, %arg5: memref<1x256xf32, #tpu.memory_space<vmem>>, %arg6: memref<128x256xbf16, #tpu.memory_space<vmem>>, %arg7: memref<1x256xf32, #tpu.memory_space<vmem>>, %arg8: memref<128x32xf32, #tpu.memory_space<vmem>>, %arg9: memref<128x256xf32, #tpu.memory_space<vmem>>) attributes {dimension_semantics = [#tpu.dimension_semantics<parallel>], iteration_bounds = array<i64: 2>, scalar_prefetch = 0 : i64, scratch_operands = 0 : i64, tpu.core_type = #tpu.core_type<tc>, window_params = [{transform_indices = @transform_0, window_bounds = array<i64: 128, 256>}, {pipeline_mode = #tpu.pipeline_mode<synchronous>, transform_indices = @transform_1, window_bounds = array<i64: 256, 128>}, {pipeline_mode = #tpu.pipeline_mode<synchronous>, transform_indices = @transform_2, window_bounds = array<i64: 1, 128>}, {pipeline_mode = #tpu.pipeline_mode<synchronous>, transform_indices = @transform_3, window_bounds = array<i64: 128, 256>}, {pipeline_mode = #tpu.pipeline_mode<synchronous>, transform_indices = @transform_4, window_bounds = array<i64: 1, 256>}, {pipeline_mode = #tpu.pipeline_mode<synchronous>, transform_indices = @transform_5, window_bounds = array<i64: 128, 256>}, {pipeline_mode = #tpu.pipeline_mode<synchronous>, transform_indices = @transform_6, window_bounds = array<i64: 1, 256>}, {transform_indices = @transform_7, window_bounds = array<i64: 128, 32>}, {transform_indices = @transform_8, window_bounds = array<i64: 128, 256>}]} {
    %c0 = arith.constant 0 : index
    %c0_0 = arith.constant 0 : index
    %0 = vector.load %arg1[%c0, %c0_0] : memref<128x256xf32, #tpu.memory_space<vmem>>, vector<128x256xf32>
    %1 = arith.truncf %0 : vector<128x256xf32> to vector<128x256xbf16>
    %c0_1 = arith.constant 0 : index
    %c0_2 = arith.constant 0 : index
    %2 = vector.load %arg2[%c0_1, %c0_2] : memref<256x128xbf16, #tpu.memory_space<vmem>>, vector<256x128xbf16>
    %cst = arith.constant dense<0.000000e+00> : vector<128x128xf32>
    %3 = tpu.matmul %1, %2, %cst {dimension_numbers = #tpu.dot_dimension_numbers<[1], [0], [0], [1], [0, 0, 1, 1], [], []>} : vector<128x256xbf16>, vector<256x128xbf16>, vector<128x128xf32> -> vector<128x128xf32>
    %c0_3 = arith.constant 0 : index
    %c0_4 = arith.constant 0 : index
    %4 = vector.load %arg3[%c0_3, %c0_4] : memref<1x128xf32, #tpu.memory_space<vmem>>, vector<1x128xf32>
    %5 = vector.broadcast %4 : vector<1x128xf32> to vector<128x128xf32>
    %6 = arith.addf %3, %5 : vector<128x128xf32>
    %7 = math.tanh %6 : vector<128x128xf32>
    %8 = arith.truncf %7 : vector<128x128xf32> to vector<128x128xbf16>
    %c0_5 = arith.constant 0 : index
    %c0_6 = arith.constant 0 : index
    %9 = vector.load %arg4[%c0_5, %c0_6] : memref<128x256xbf16, #tpu.memory_space<vmem>>, vector<128x256xbf16>
    %cst_7 = arith.constant dense<0.000000e+00> : vector<128x256xf32>
    %10 = tpu.matmul %8, %9, %cst_7 {dimension_numbers = #tpu.dot_dimension_numbers<[1], [0], [0], [1], [0, 0, 1, 1], [], []>} : vector<128x128xbf16>, vector<128x256xbf16>, vector<128x256xf32> -> vector<128x256xf32>
    %c0_8 = arith.constant 0 : index
    %c0_9 = arith.constant 0 : index
    %11 = vector.load %arg5[%c0_8, %c0_9] : memref<1x256xf32, #tpu.memory_space<vmem>>, vector<1x256xf32>
    %12 = vector.broadcast %11 : vector<1x256xf32> to vector<128x256xf32>
    %13 = arith.addf %10, %12 : vector<128x256xf32>
    %14 = vector.extract_strided_slice %13 {offsets = [0, 0], sizes = [128, 32], strides = [1, 1]} : vector<128x256xf32> to vector<128x32xf32>
    %c0_10 = arith.constant 0 : index
    %c0_11 = arith.constant 0 : index
    %15 = vector.load %arg8[%c0_10, %c0_11] : memref<128x32xf32, #tpu.memory_space<vmem>>, vector<128x32xf32>
    tpu.vector_store %arg8[%c0_10, %c0_11], %14 {strides = array<i32>} : memref<128x32xf32, #tpu.memory_space<vmem>>, vector<128x32xf32>,
    %16 = vector.extract_strided_slice %13 {offsets = [0, 128], sizes = [128, 128], strides = [1, 1]} : vector<128x256xf32> to vector<128x128xf32>
    %17 = math.tanh %16 : vector<128x128xf32>
    %18 = arith.truncf %17 : vector<128x128xf32> to vector<128x128xbf16>
    %c0_12 = arith.constant 0 : index
    %c0_13 = arith.constant 0 : index
    %19 = vector.load %arg6[%c0_12, %c0_13] : memref<128x256xbf16, #tpu.memory_space<vmem>>, vector<128x256xbf16>
    %cst_14 = arith.constant dense<0.000000e+00> : vector<128x256xf32>
    %20 = tpu.matmul %18, %19, %cst_14 {dimension_numbers = #tpu.dot_dimension_numbers<[1], [0], [0], [1], [0, 0, 1, 1], [], []>} : vector<128x128xbf16>, vector<128x256xbf16>, vector<128x256xf32> -> vector<128x256xf32>
    %c0_15 = arith.constant 0 : index
    %c0_16 = arith.constant 0 : index
    %21 = vector.load %arg7[%c0_15, %c0_16] : memref<1x256xf32, #tpu.memory_space<vmem>>, vector<1x256xf32>
    %22 = vector.broadcast %21 : vector<1x256xf32> to vector<128x256xf32>
    %23 = arith.addf %20, %22 : vector<128x256xf32>
    %cst_17 = arith.constant 5.000000e-01 : f32
    %24 = vector.broadcast %cst_17 : f32 to vector<128x256xf32>
    %25 = arith.mulf %24, %23 : vector<128x256xf32>
    %26 = math.tanh %25 : vector<128x256xf32>
    %cst_18 = arith.constant 1.000000e+00 : f32
    %27 = vector.broadcast %cst_18 : f32 to vector<128x256xf32>
    %28 = arith.addf %26, %27 : vector<128x256xf32>
    %cst_19 = arith.constant 5.000000e-01 : f32
    %29 = vector.broadcast %cst_19 : f32 to vector<128x256xf32>
    %30 = arith.mulf %29, %28 : vector<128x256xf32>
    %c0_20 = arith.constant 0 : index
    %c0_21 = arith.constant 0 : index
    %31 = vector.load %arg9[%c0_20, %c0_21] : memref<128x256xf32, #tpu.memory_space<vmem>>, vector<128x256xf32>
    tpu.vector_store %arg9[%c0_20, %c0_21], %30 {strides = array<i32>} : memref<128x256xf32, #tpu.memory_space<vmem>>, vector<128x256xf32>,
    return
  }
  func.func @transform_0(%arg0: i32) -> (i32, i32) {
    %c0_i32 = arith.constant 0 : i32
    %c0_i32_0 = arith.constant 0 : i32
    return %arg0, %c0_i32 : i32, i32
  }
  func.func @transform_1(%arg0: i32) -> (i32, i32) {
    %c0_i32 = arith.constant 0 : i32
    %c0_i32_0 = arith.constant 0 : i32
    %c0_i32_1 = arith.constant 0 : i32
    return %c0_i32, %c0_i32_0 : i32, i32
  }
  func.func @transform_2(%arg0: i32) -> (i32, i32) {
    %c0_i32 = arith.constant 0 : i32
    %c0_i32_0 = arith.constant 0 : i32
    %c0_i32_1 = arith.constant 0 : i32
    return %c0_i32, %c0_i32_0 : i32, i32
  }
  func.func @transform_3(%arg0: i32) -> (i32, i32) {
    %c0_i32 = arith.constant 0 : i32
    %c0_i32_0 = arith.constant 0 : i32
    %c0_i32_1 = arith.constant 0 : i32
    return %c0_i32, %c0_i32_0 : i32, i32
  }
  func.func @transform_4(%arg0: i32) -> (i32, i32) {
    %c0_i32 = arith.constant 0 : i32
    %c0_i32_0 = arith.constant 0 : i32
    %c0_i32_1 = arith.constant 0 : i32
    return %c0_i32, %c0_i32_0 : i32, i32
  }
  func.func @transform_5(%arg0: i32) -> (i32, i32) {
    %c0_i32 = arith.constant 0 : i32
    %c0_i32_0 = arith.constant 0 : i32
    %c0_i32_1 = arith.constant 0 : i32
    return %c0_i32, %c0_i32_0 : i32, i32
  }
  func.func @transform_6(%arg0: i32) -> (i32, i32) {
    %c0_i32 = arith.constant 0 : i32
    %c0_i32_0 = arith.constant 0 : i32
    %c0_i32_1 = arith.constant 0 : i32
    return %c0_i32, %c0_i32_0 : i32, i32
  }
  func.func @transform_7(%arg0: i32) -> (i32, i32) {
    %c0_i32 = arith.constant 0 : i32
    %c0_i32_0 = arith.constant 0 : i32
    return %arg0, %c0_i32 : i32, i32
  }
  func.func @transform_8(%arg0: i32) -> (i32, i32) {
    %c0_i32 = arith.constant 0 : i32
    %c0_i32_0 = arith.constant 0 : i32
    return %arg0, %c0_i32 : i32, i32
  }
}

</mosaic_0001>

<bundles_post_ra>
// kernel: tpu_custom_call.1
= control target key start
LH: loop header
LB: loop body
LE: loop exit
PB: predicated region body
PF: predicated region fallthrough
CT: control target
= control target key end

     0   :  { %s2635_s0 = inlined_call_operand.hbm [shape: f32[256,256], index: 0, kind: input, shape index: {}]   ;;  %s2636_s1 = inlined_call_operand.hbm [shape: bf16[256,128], index: 1, kind: input, shape index: {}]   ;;  %s2637_s2 = inlined_call_operand.hbm [shape: f32[1,128], index: 2, kind: input, shape index: {}]   ;;  %s2638_s3 = inlined_call_operand.hbm [shape: bf16[128,256], index: 3, kind: input, shape index: {}]   ;;  %s2639_s4 = inlined_call_operand.vmem [shape: f32[1,256], index: 4, kind: input, shape index: {}]   ;;  %s2640_s5 = inlined_call_operand.hbm [shape: bf16[128,256], index: 5, kind: input, shape index: {}]   ;;  %s2641_s6 = inlined_call_operand.vmem [shape: f32[1,256], index: 6, kind: input, shape index: {}]   ;;  %s2642_s7 = inlined_call_operand.vmem [shape: f32[256,32], index: 7, kind: output, shape index: {0}]   ;;  %s2643_s8 = inlined_call_operand.hbm [shape: f32[256,256], index: 8, kind: output, shape index: {1}]  }
   0x1   :  { %2644 = sst [smem:[#allocation16_spill]] %s2636_s1 }
   0x2   :  { %2645 = sst [smem:[#allocation17_spill]] %s2637_s2 }
   0x3   :  { %14 = vsyncpa [#allocation3], 0 }
   0x4   :  { %16 = vsyncpa [#allocation3 + $0x1], 0 }
   0x5   :  { %17 = vsyncpa [#allocation6], 0 }
   0x6   :  { %18 = vsyncpa [#allocation9], 0 }
   0x7   :  { %19 = vsyncpa [#allocation4], 0 }
   0x8   :  { %21 = vsyncpa [#allocation4 + $0x1], 0  ;;  %s2265_s27 = smov 0   ;;  %s2267_s28 = smov 0  }
   0x9   :  { %s2269_s29 = smov 0   ;;  %s2271_s30 = smov 0  }
   0xa LB: > { %s2286_s9 = sadd.s32 4294967295, %s2206_s30   ;;  %s1472_s10 = sadd.s32 4294967294, %s2206_s30   ;;  %s2206_s30 = sphi %s2271_s30, %s2658_s30   ;;  %s2202_s29 = sphi %s2269_s29, %s2657_s29   ;;  %s2198_s28 = sphi %s2267_s28, %s2656_s28   ;;  %s2194_s27 = sphi %s2265_s27, %s2655_s27  }
   0xb   : > { %p47_p0 = scmp.ne.s32.totalorder %s2198_s28, %s2194_s27  ;;  %p48_p1 = scmp.eq.s32.totalorder %s2286_s9, 0 }
   0xc   : > { %p223_p2 = scmp.eq.s32.totalorder %s2286_s9, 1  ;;  %p229_p3 = scmp.eq.s32.totalorder %s1472_s10, 1 }
   0xd   : > { %p2295_p4 = por %p48_p1, %p47_p0  ;;  %p1473_p5 = scmp.ge.s32.totalorder %s2206_s30, 1 }
   0xe   : > { %p2300_p6 = por %p229_p3, %p47_p0  ;;  %p236_p7 = scmp.lt.s32.totalorder %s2206_s30, 3 }
   0xf   : > { %s2648_s1 = sld [smem:[#allocation16_spill]]  ;;  %s2208_s17 = smov [#allocation5]  }
  0x10   : > { %p2308_p8 = pnand %p1473_p5, %p236_p7  ;;  %s249_s18 = sshll.u32 %s2208_s17, 4  ;;  %s250_s18 = int_to_ptr.vmem [resolvable:$true] %s249_s18 }
  0x11   : > { %s273_s22 = sshll.u32 %s2638_s3, 4  ;;  %s2209_s23 = smov 64   ;;  %s274_s22 = int_to_ptr.hbm [resolvable:$true] %s273_s22 }
  0x12   : > { %p1778_p9 = pneg %p2308_p8  ;;  %s2210_s24 = smov 4  }
  0x13   : > { %s2211_s25 = smov [#allocation8]   ;;  %s2212_s10 = smov 128  }
  0x14   : > { %p2316_p10 = pnand %p1778_p9, %p48_p1  ;;  %s275_s26 = sshll.u32 %s2211_s25, 4  ;;  %s276_s26 = int_to_ptr.vmem [resolvable:$true] %s275_s26 }
  0x15   : > { %s247_s15 = sshll.u32 %s2648_s1, 4  ;;  %s2213_s13 = smov 8   ;;  %s248_s15 = int_to_ptr.hbm [resolvable:$true] %s247_s15 }
  0x16   : > { %1781 = dma.hbm_to_vmem [thread:$0]  (!%p2316_p10), %s248_s15, 2048, %s250_s18, [#allocation6], %s2209_s23, %s2209_s23, %s2210_s24  }
  0x17   : > { %1787 = dma.hbm_to_vmem [thread:$0]  (!%p2316_p10), %s274_s22, 2048, %s276_s26, [#allocation9], %s2212_s10, %s2212_s10, %s2213_s13  }
  0x18   : > { %s2651_s2 = sld [smem:[#allocation17_spill]]  ;;  %s2214_s15 = smov [#allocation7]  }
  0x19   : > { %s264_s18 = sshll.u32 %s2214_s15, 4  ;;  %s290_s24 = sshll.u32 %s2640_s5, 4  ;;  %s265_s18 = int_to_ptr.vmem [resolvable:$true] %s264_s18  ;;  %s291_s24 = int_to_ptr.hbm [resolvable:$true] %s290_s24 }
  0x1a   : > { %s2215_s22 = smov [#allocation10]   ;;  %s2339_s26 = sadd.s32 1, %s2206_s30  }
  0x1b   : > { %s292_s25 = sshll.u32 %s2215_s22, 4  ;;  %s34_s14 = sadd.s32 1, %s2202_s29  ;;  %s293_s25 = int_to_ptr.vmem [resolvable:$true] %s292_s25 }
  0x1c   : > { %1790 = dma.hbm_to_vmem [thread:$0]  (!%p2316_p10), %s291_s24, 2048, %s293_s25, [#allocation9], %s2212_s10, %s2212_s10, %s2213_s13  }
  0x1d   : > { %s31_s17 = ssub.s32 %s2206_s30, %s2339_s26  ;;  %p41_p12 = scmp.ne.s32.totalorder %s2202_s29, %s2198_s28 }
  0x1e   : > { %s262_s20 = sshll.u32 %s2651_s2, 4  ;;  %p32_p13 = scmp.eq.s32.totalorder %s31_s17, 0  ;;  %s263_s20 = int_to_ptr.hbm [resolvable:$true] %s262_s20 }
  0x1f   : > { %1784 = dma.hbm_to_vmem [thread:$0]  (!%p2316_p10), %s263_s20, 16, %s265_s18, [#allocation6]  }
  0x20   : > { %p42_p0 = scmp.eq.s32.totalorder %s2206_s30, 0  ;;  %p2349_p3 = por %p223_p2, %p41_p12 }
  0x21   : > { %p1803_p5 = scmp.lt.s32.totalorder %s2206_s30, 2  ;;  %s309_s18 = sand.u32 1, %s2202_s29  }
  0x22   : > { %s2355_s20 = scalar_select %p32_p13, %s2202_s29, %s34_s14  }
  0x23   : > { %p43_p7 = por %p42_p0, %p41_p12  ;;  %s1479_s19 = sshll.u32 %s309_s18, 8 }
  0x24   : > { %s1691_s10 = sshll.u32 %s2206_s30, 8  ;;  %s313_s24 = scalar_lea.vmem [#allocation2], %s1479_s19 }
  0x25   : > { %s319_s23 = scalar_lea.hbm %s2635_s0, %s1691_s10  ;;  %s322_s22 = sshll.u32 %s313_s24, 4  ;;  %s323_s22 = int_to_ptr.vmem [resolvable:$true] %s322_s22 }
  0x26   : > { %s320_s25 = sshll.u32 %s319_s23, 4  ;;  %p2362_p2 = pnand %p1803_p5, %p43_p7  ;;  %s321_s25 = int_to_ptr.hbm [resolvable:$true] %s320_s25 }
  0x27   : > { %s310_s14 = scalar_lea.sflag [#allocation3], %s309_s18  ;;  %s2102_s1 = sshra.s32 %s321_s25, 4  ;;  %s2103_s1 = int_to_ptr.hbm [resolvable:$true] %s2102_s1 }
  0x28   : > { %s2104_s2 = scalar_lea.hbm %s2103_s1, 256  ;;  %p2106_p10 = pneg %p2362_p2 }
  0x29   : > { %p2105_p9 = scmp.ne.s32.totalorder %s2103_s1, %s2104_s2  ;;  %s2109_s13 = scalar_lea.hbm %s2635_s0, 512 }
  0x2a   : > { %p2110_p0 = scmp.lt.s32.totalorder %s2103_s1, %s2635_s0  ;;  %p2111_p5 = scmp.lt.s32.totalorder %s2109_s13, %s2104_s2 }
  0x2b   : > { %p2107_p12 = pnand %p2106_p10, %p2105_p9 }
  0x2c   : > { %p2112_p7 = por %p2111_p5, %p2110_p0 }
  0x2d   : > { %p2108_p13 = pneg %p2107_p12 }
  0x2f   : > { %p2113_p11 = pnand %p2112_p7, %p2108_p13 }
  0x31   : > { %2116 = shalt.err (!%p2113_p11)
}
  0x32   : > { %s2216_s18 = smov 256   ;;  %s2217_s24 = smov 16  }
  0x33   : > { %1794 = dma.hbm_to_vmem [thread:$0]  (!%p2362_p2), %s321_s25, 4096, %s323_s22, %s310_s14, %s2216_s18, %s2216_s18, %s2217_s24  }
  0x34   : > { %334 = sbr.rel (%p2308_p8) target bundleno = 658 (0x292), region = 48  ;;  %s2379_s10 = sand.u32 (!%p2308_p8), 1, %s2198_s28  }
  0x35   : > { %s1484_s1 = sshll.u32 (!%p2308_p8), %s2379_s10, 8  ;;  %s337_s2 = scalar_lea.sflag (!%p2308_p8), [#allocation3], %s2379_s10 }
  0x36   : > { %s2385_s19 = scalar_lea.vmem (!%p2308_p8), [#allocation2], %s1484_s1 }
  0x39   : > { %2177 = dma.done.wait (%p2295_p4), %s337_s2, 4096  }
  0x3a   : > { %2179 = vsyncadd (%p2295_p4), %s337_s2, 4294963200 }
  0x3b   : > { %2181 = dma.done.wait (%p48_p1), [#allocation6], 2064  }
  0x3c   : > { %2183 = vsyncadd (%p48_p1), [#allocation6], 4294965232 }
  0x3d   : > { %2185 = dma.done.wait (%p48_p1), [#allocation9], 4096  }
  0x3e   : > { %2187 = vsyncadd (%p48_p1), [#allocation9], 4294963200  ;;  %v1699_v0 = vld [vmem:[#allocation5 + $0x38] sm:$0xff]  ;;  %v1698_v2 = vld [vmem:[#allocation5 + $0x30] sm:$0xff]  ;;  %s1490_s11 = sshll.u32 %s2286_s9, 4  ;;  %vm909_vm0 = vcmask 261120  }
  0x3f   : > { %v1707_v1 = vld [vmem:[#allocation5 + $0x78] sm:$0xff]  ;;  %587 = vmatpush.bf16.msra.mxu0 %v1699_v0  ;;  %v1706_v3 = vld [vmem:[#allocation5 + $0x70] sm:$0xff]  ;;  %1742 = vmatpush.bf16.msra.mxu2 %v1699_v0  ;;  %v1697_v4 = vld [vmem:[#allocation5 + $0x28] sm:$0xff]  ;;  %p401_p1 = scmp.lt.s32.totalorder %s1490_s11, 31  ;;  %s2539_s18 = scalar_lea.vmem [#allocation11], %s1484_s1 }
  0x40   : > { %636 = vmatpush.bf16.msra.mxu1 %v1707_v1  ;;  %1750 = vmatpush.bf16.msra.mxu3 %v1707_v1  ;;  %v1705_v5 = vld [vmem:[#allocation5 + $0x68] sm:$0xff]  ;;  %v1696_v6 = vld [vmem:[#allocation5 + $0x20] sm:$0xff]  ;;  %v1695_v8 = vld [vmem:[#allocation5 + $0x18] sm:$0xff]  ;;  %s1741_s24 = sshll.u32 %s2286_s9, 8  ;;  %s1316_s9 = scalar_lea.sflag [#allocation4], %s2379_s10 }
  0x41   : > { %v1704_v7 = vld [vmem:[#allocation5 + $0x60] sm:$0xff]  ;;  %v1703_v9 = vld [vmem:[#allocation5 + $0x58] sm:$0xff]  ;;  %v1694_v10 = vld [vmem:[#allocation5 + $0x10] sm:$0xff]  ;;  %s2660_s11 = smov (!%p401_p1, %s1490_s11), 31 }
  0x42   : > { %v1702_v11 = vld [vmem:[#allocation5 + $0x50] sm:$0xff]  ;;  %v1693_v12 = vld [vmem:[#allocation5 + $0x8] sm:$0xff]  ;;  %v1692_v14 = vld [vmem:[#allocation5] sm:$0xff]  ;;  %s1491_s25 = sshll.u32 %s2660_s11, 3  ;;  %s1333_s11 = sshll.u32 %s2539_s18, 4  ;;  %s1334_s11 = int_to_ptr.vmem [resolvable:$true] %s1333_s11 }
  0x43   : > { %588 = vmatpush.bf16.msra.mxu0 %v1698_v2  ;;  %1743 = vmatpush.bf16.msra.mxu2 %v1698_v2  ;;  %v1701_v13 = vld [vmem:[#allocation5 + $0x48] sm:$0xff]  ;;  %v1700_v15 = vld [vmem:[#allocation5 + $0x40] sm:$0xff]  ;;  %v409_v17 = vld [vmem:[%s2385_s19 + $0x10] sm:$0xff]  ;;  %s2458_s13 = scalar_lea.vmem %s2642_s7, %s1491_s25 }
  0x44   : > { %637 = vmatpush.bf16.msra.mxu1 %v1706_v3  ;;  %1751 = vmatpush.bf16.msra.mxu3 %v1706_v3  ;;  %v407_v16 = vld [vmem:[%s2385_s19] sm:$0xff]  ;;  %v408_v18 = vld [vmem:[%s2385_s19 + $0x8] sm:$0xff]  ;;  %v410_v19 = vld [vmem:[%s2385_s19 + $0x18] sm:$0xff] }
  0x45   : > { %v439_v20 = vpack.c.bf16 %v409_v17, %v407_v16  ;;  %v440_v21 = vpack.c.bf16 %v410_v19, %v408_v18  ;;  %v411_v22 = vld [vmem:[%s2385_s19 + $0x20] sm:$0xff]  ;;  %v413_v23 = vld [vmem:[%s2385_s19 + $0x30] sm:$0xff]  ;;  %v412_v24 = vld [vmem:[%s2385_s19 + $0x28] sm:$0xff] }
  0x46   : > { %v414_v25 = vld [vmem:[%s2385_s19 + $0x38] sm:$0xff]  ;;  %v441_v26 = vpack.c.bf16 %v413_v23, %v411_v22  ;;  %v423_v28 = vld [vmem:[%s2385_s19 + $0x80] sm:$0xff]  ;;  %v425_v29 = vld [vmem:[%s2385_s19 + $0x90] sm:$0xff] }
  0x47   : > { %589 = vmatpush.bf16.msra.mxu0 %v1697_v4  ;;  %1744 = vmatpush.bf16.msra.mxu2 %v1697_v4  ;;  %v442_v27 = vpack.c.bf16 %v414_v25, %v412_v24  ;;  %v447_v30 = vpack.c.bf16 %v425_v29, %v423_v28  ;;  %v424_v31 = vld [vmem:[%s2385_s19 + $0x88] sm:$0xff]  ;;  %v426_v32 = vld [vmem:[%s2385_s19 + $0x98] sm:$0xff]  ;;  %v415_v40 = vld [vmem:[%s2385_s19 + $0x40] sm:$0xff] }
  0x48   : > { %638 = vmatpush.bf16.msra.mxu1 %v1705_v5  ;;  %1752 = vmatpush.bf16.msra.mxu3 %v1705_v5  ;;  %v448_v33 = vpack.c.bf16 %v426_v32, %v424_v31  ;;  %v1722_v34 = vld [vmem:[#allocation8 + $0x74] sm:$0xf]  ;;  %v1616_v35 = vld [vmem:[#allocation8 + $0x78] sm:$0xf0]  ;;  %v1720_v37 = vld [vmem:[#allocation8 + $0x64] sm:$0xf] }
  0x49   : > { %v1619_v36 = vor.u32 %v1722_v34, %v1616_v35  ;;  %v1608_v38 = vld [vmem:[#allocation8 + $0x68] sm:$0xf0]  ;;  %v418_v43 = vld [vmem:[%s2385_s19 + $0x58] sm:$0xff]  ;;  %v427_v44 = vld [vmem:[%s2385_s19 + $0xa0] sm:$0xff] }
  0x4a   : > { %v1611_v39 = vor.u32 %v1720_v37, %v1608_v38  ;;  %v417_v41 = vld [vmem:[%s2385_s19 + $0x50] sm:$0xff]  ;;  %v416_v42 = vld [vmem:[%s2385_s19 + $0x48] sm:$0xff]  ;;  %v430_v49 = vld [vmem:[%s2385_s19 + $0xb8] sm:$0xff] }
  0x4b   : > { %590 = vmatpush.bf16.msra.mxu0 %v1696_v6  ;;  %1745 = vmatpush.bf16.msra.mxu2 %v1696_v6  ;;  %v429_v45 = vld [vmem:[%s2385_s19 + $0xb0] sm:$0xff]  ;;  %v443_v46 = vpack.c.bf16 %v417_v41, %v415_v40  ;;  %v444_v47 = vpack.c.bf16 %v418_v43, %v416_v42  ;;  %v428_v48 = vld [vmem:[%s2385_s19 + $0xa8] sm:$0xff]  ;;  %v1600_v53 = vld [vmem:[#allocation8 + $0x58] sm:$0xf0] }
  0x4c   : > { %639 = vmatpush.bf16.msra.mxu1 %v1704_v7  ;;  %1753 = vmatpush.bf16.msra.mxu3 %v1704_v7  ;;  %v449_v50 = vpack.c.bf16 %v429_v45, %v427_v44  ;;  %v450_v51 = vpack.c.bf16 %v430_v49, %v428_v48  ;;  %v1718_v52 = vld [vmem:[#allocation8 + $0x54] sm:$0xf]  ;;  %v1716_v55 = vld [vmem:[#allocation8 + $0x44] sm:$0xf]  ;;  %v1592_v56 = vld [vmem:[#allocation8 + $0x48] sm:$0xf0] }
  0x4d   : > { %v1603_v54 = vor.u32 %v1718_v52, %v1600_v53  ;;  %v1614_v57 = vld [vmem:[#allocation8 + $0x70] sm:$0xf]  ;;  %v1595_v58 = vor.u32 %v1716_v55, %v1592_v56  ;;  %v1723_v59 = vld [vmem:[#allocation8 + $0x74] sm:$0xf0]  ;;  %v1606_v60 = vld [vmem:[#allocation8 + $0x60] sm:$0xf] }
  0x4e   : > { %v1721_v61 = vld [vmem:[#allocation8 + $0x64] sm:$0xf0]  ;;  %v1714_v62 = vld [vmem:[#allocation8 + $0x34] sm:$0xf]  ;;  %v1584_v63 = vld [vmem:[#allocation8 + $0x38] sm:$0xf0]  ;;  %v1615_v0 = vor.u32 %v1723_v59, %v1614_v57 }
  0x4f   : > { %591 = vmatpush.bf16.msra.mxu0 %v1695_v8  ;;  %1746 = vmatpush.bf16.msra.mxu2 %v1695_v8  ;;  %v419_v1 = vld [vmem:[%s2385_s19 + $0x60] sm:$0xff]  ;;  %v421_v2 = vld [vmem:[%s2385_s19 + $0x70] sm:$0xff]  ;;  %v1607_v3 = vor.u32 %v1721_v61, %v1606_v60  ;;  %v420_v4 = vld [vmem:[%s2385_s19 + $0x68] sm:$0xff]  ;;  %v1587_v6 = vor.u32 %v1714_v62, %v1584_v63 }
  0x50   : > { %640 = vmatpush.bf16.msra.mxu1 %v1703_v9  ;;  %1754 = vmatpush.bf16.msra.mxu3 %v1703_v9  ;;  %v422_v5 = vld [vmem:[%s2385_s19 + $0x78] sm:$0xff]  ;;  %v1712_v7 = vld [vmem:[#allocation8 + $0x24] sm:$0xf]  ;;  %v1576_v8 = vld [vmem:[#allocation8 + $0x28] sm:$0xf0] }
  0x51   : > { %v1598_v9 = vld [vmem:[#allocation8 + $0x50] sm:$0xf]  ;;  %v434_v16 = vld [vmem:[%s2385_s19 + $0xd8] sm:$0xff]  ;;  %v1579_v17 = vor.u32 %v1712_v7, %v1576_v8  ;;  %v436_v23 = vld [vmem:[%s2385_s19 + $0xe8] sm:$0xff] }
  0x52   : > { %v437_v22 = vld [vmem:[%s2385_s19 + $0xf0] sm:$0xff]  ;;  %v438_v24 = vld [vmem:[%s2385_s19 + $0xf8] sm:$0xff]  ;;  %v1717_v28 = vld [vmem:[#allocation8 + $0x44] sm:$0xf0] }
  0x53   : > { %592 = vmatpush.bf16.msra.mxu0 %v1694_v10  ;;  %1747 = vmatpush.bf16.msra.mxu2 %v1694_v10  ;;  %v1719_v10 = vld [vmem:[#allocation8 + $0x54] sm:$0xf0]  ;;  %v1710_v32 = vld [vmem:[#allocation8 + $0x14] sm:$0xf]  ;;  %v1713_v37 = vld [vmem:[#allocation8 + $0x24] sm:$0xf0] }
  0x54   : > { %641 = vmatpush.bf16.msra.mxu1 %v1702_v11  ;;  %1755 = vmatpush.bf16.msra.mxu3 %v1702_v11  ;;  %v431_v11 = vld [vmem:[%s2385_s19 + $0xc0] sm:$0xff]  ;;  %v1599_v18 = vor.u32 %v1719_v10, %v1598_v9  ;;  %v1715_v31 = vld [vmem:[#allocation8 + $0x34] sm:$0xf0]  ;;  %v1560_v42 = vld [vmem:[#allocation8 + $0x8] sm:$0xf0] }
  0x55   : > { %v1711_v40 = vld [vmem:[#allocation8 + $0x14] sm:$0xf0]  ;;  %v1708_v41 = vld [vmem:[#allocation8 + $0x4] sm:$0xf]  ;;  %v1558_v45 = vld [vmem:[#allocation8] sm:$0xf] }
  0x56   : > { %v1563_v44 = vor.u32 %v1708_v41, %v1560_v42  ;;  %v2431_v48 = vld [vmem:[#allocation7] ss:$0 sm:$0xff] }
  0x57   : > { %593 = vmatpush.bf16.msra.mxu0 %v1693_v12  ;;  %1748 = vmatpush.bf16.msra.mxu2 %v1693_v12  ;;  %v433_v12 = vld [vmem:[%s2385_s19 + $0xd0] sm:$0xff] }
  0x58   : > { %642 = vmatpush.bf16.msra.mxu1 %v1701_v13  ;;  %1756 = vmatpush.bf16.msra.mxu3 %v1701_v13  ;;  %v445_v13 = vpack.c.bf16 %v421_v2, %v419_v1  ;;  %v451_v19 = vpack.c.bf16 %v433_v12, %v431_v11 }
  0x5b   : > { %594 = vmatpush.bf16.msra.mxu0 %v1692_v14  ;;  %1749 = vmatpush.bf16.msra.mxu2 %v1692_v14  ;;  %v446_v14 = vpack.c.bf16 %v422_v5, %v420_v4 }
  0x5c   : > { %643 = vmatpush.bf16.msra.mxu1 %v1700_v15  ;;  %1757 = vmatpush.bf16.msra.mxu3 %v1700_v15  ;;  %v432_v15 = vld [vmem:[%s2385_s19 + $0xc8] sm:$0xff] }
  0x5e   : > { %595 = vmatmul.bf16.vlgmr.msra.gmra.mxu0 %v439_v20  ;;  %615 = vmatmul.bf16.vlgmr.msra.gmra.mxu2 %v447_v30  ;;  %v452_v20 = vpack.c.bf16 %v434_v16, %v432_v15  ;;  %v1582_v30 = vld [vmem:[#allocation8 + $0x30] sm:$0xf] }
  0x5f   : > { %644 = vmatmul.bf16.vlgmr.msra.gmra.mxu1 %v440_v21  ;;  %664 = vmatmul.bf16.vlgmr.msra.gmra.mxu3 %v448_v33  ;;  %v435_v21 = vld [vmem:[%s2385_s19 + $0xe0] sm:$0xff]  ;;  %v1583_v34 = vor.u32 %v1715_v31, %v1582_v30  ;;  %s1332_s19 = scalar_lea.hbm %s2643_s8, %s1741_s24 }
  0x60   : > { %860 = vmatpush.bf16.msrb.mxu3 %v1619_v36  ;;  %811 = vmatpush.bf16.msrb.mxu2 %v1615_v0  ;;  %v453_v25 = vpack.c.bf16 %v437_v22, %v435_v21  ;;  %v1568_v33 = vld [vmem:[#allocation8 + $0x18] sm:$0xf0]  ;;  %v1574_v36 = vld [vmem:[#allocation8 + $0x20] sm:$0xf]  ;;  %s1335_s16 = sshll.u32 %s1332_s19, 4  ;;  %s1336_s16 = int_to_ptr.hbm [resolvable:$true] %s1335_s16 }
  0x61   : > { %v1571_v35 = vor.u32 %v1710_v32, %v1568_v33  ;;  %v1575_v38 = vor.u32 %v1713_v37, %v1574_v36  ;;  %s2146_s22 = sshra.s32 %s1336_s16, 4  ;;  %s2147_s22 = int_to_ptr.hbm [resolvable:$true] %s2146_s22 }
  0x62   : > { %s2148_s25 = scalar_lea.hbm %s2147_s22, 256  ;;  %p2153_p2 = scmp.lt.s32.totalorder %s2147_s22, %s2643_s8 }
  0x63   : > { %p2149_p4 = scmp.ne.s32.totalorder %s2147_s22, %s2148_s25 }
  0x64   : > { %861 = vmatpush.bf16.msrb.mxu3 %v1611_v39  ;;  %812 = vmatpush.bf16.msrb.mxu2 %v1607_v3  ;;  %v1566_v39 = vld [vmem:[#allocation8 + $0x10] sm:$0xf] }
  0x65   : > { %v1567_v43 = vor.u32 %v1711_v40, %v1566_v39  ;;  %v1739_v39 = vld [vmem:[#allocation10 + $0x74] sm:$0xf0]  ;;  %v1738_v40 = vld [vmem:[#allocation10 + $0x74] sm:$0xf]  ;;  %p2150_p8 = pnand %p2149_p4, %p2349_p3 }
  0x67   : > { %p2151_p11 = pneg %p2150_p8 }
  0x68   : > { %862 = vmatpush.bf16.msrb.mxu3 %v1603_v54  ;;  %813 = vmatpush.bf16.msrb.mxu2 %v1599_v18 }
  0x6c   : > { %863 = vmatpush.bf16.msrb.mxu3 %v1595_v58 }
  0x6e   : > { %600 = vmatmul.bf16.gmra.mxu0 %v441_v26  ;;  %620 = vmatmul.bf16.gmra.mxu2 %v449_v50  ;;  %v454_v26 = vpack.c.bf16 %v438_v24, %v436_v23 }
  0x6f   : > { %649 = vmatmul.bf16.gmra.mxu1 %v442_v27  ;;  %669 = vmatmul.bf16.gmra.mxu3 %v450_v51  ;;  %v1590_v27 = vld [vmem:[#allocation8 + $0x40] sm:$0xf] }
  0x70   : > { %864 = vmatpush.bf16.msrb.mxu3 %v1587_v6  ;;  %v1591_v29 = vor.u32 %v1717_v28, %v1590_v27 }
  0x72   : > { %814 = vmatpush.bf16.msrb.mxu2 %v1591_v29 }
  0x74   : > { %865 = vmatpush.bf16.msrb.mxu3 %v1579_v17 }
  0x76   : > { %815 = vmatpush.bf16.msrb.mxu2 %v1583_v34 }
  0x78   : > { %866 = vmatpush.bf16.msrb.mxu3 %v1571_v35 }
  0x7a   : > { %816 = vmatpush.bf16.msrb.mxu2 %v1575_v38  ;;  %v1678_v38 = vld [vmem:[#allocation10 + $0x70] sm:$0xf] }
  0x7b   : > { %v1679_v42 = vor.u32 %v1739_v39, %v1678_v38 }
  0x7c   : > { %867 = vmatpush.bf16.msrb.mxu3 %v1563_v44  ;;  %v1670_v44 = vld [vmem:[#allocation10 + $0x60] sm:$0xf] }
  0x7d   : > { %1052 = vmatpush.bf16.msrb.mxu0 %v1679_v42 }
  0x7e   : > { %605 = vmatmul.bf16.gmra.mxu0 %v443_v46  ;;  %625 = vmatmul.bf16.gmra.mxu2 %v451_v19  ;;  %v1709_v46 = vld [vmem:[#allocation8 + $0x4] sm:$0xf0] }
  0x7f   : > { %654 = vmatmul.bf16.gmra.mxu1 %v444_v47  ;;  %674 = vmatmul.bf16.gmra.mxu3 %v452_v20  ;;  %v1559_v47 = vor.u32 %v1709_v46, %v1558_v45  ;;  %v1737_v45 = vld [vmem:[#allocation10 + $0x64] sm:$0xf0] }
  0x80   : > { %817 = vmatpush.bf16.msrb.mxu2 %v1567_v43  ;;  %v1680_v43 = vld [vmem:[#allocation10 + $0x78] sm:$0xf0] }
  0x84   : > { %818 = vmatpush.bf16.msrb.mxu2 %v1559_v47  ;;  %v1683_v47 = vor.u32 %v1738_v40, %v1680_v43  ;;  %v1630_v43 = vld [vmem:[#allocation10 + $0x10] sm:$0xf] }
  0x86   : > { %1101 = vmatpush.bf16.msrb.mxu1 %v1683_v47  ;;  %v1632_v47 = vld [vmem:[#allocation10 + $0x18] sm:$0xf0] }
  0x8e   : > { %610 = vmatmul.bf16.gmra.mxu0 %v445_v13  ;;  %630 = vmatmul.bf16.gmra.mxu2 %v453_v25 }
  0x8f   : > { %659 = vmatmul.bf16.gmra.mxu1 %v446_v14  ;;  %679 = vmatmul.bf16.gmra.mxu3 %v454_v26 }
  0xdb   : > { %v596_v49 = vpop.f32.mrf.mxu0 }
  0xdc   : > { %v645_v50 = vpop.f32.mrf.mxu1  ;;  %v597_v51 = vadd.f32 %v2431_v48, %v596_v49  ;;  %v1736_v49 = vld [vmem:[#allocation10 + $0x64] sm:$0xf] }
  0xde   : > { %v646_v52 = vadd.f32 %v645_v50, %v597_v51  ;;  %v1672_v50 = vld [vmem:[#allocation10 + $0x68] sm:$0xf0]  ;;  %v1671_v51 = vor.u32 %v1737_v45, %v1670_v44  ;;  %v1727_v44 = vld [vmem:[#allocation10 + $0x14] sm:$0xf0]  ;;  %v1726_v45 = vld [vmem:[#allocation10 + $0x14] sm:$0xf] }
  0xe0   : > { %1854 = vtanh.f32 %v646_v52  ;;  %v1675_v52 = vor.u32 %v1736_v49, %v1672_v50  ;;  %1053 = vmatpush.bf16.msrb.mxu0 %v1671_v51  ;;  %v1635_v49 = vor.u32 %v1726_v45, %v1632_v47 }
  0xe1   : > { %v616_v14 = vpop.f32.mrf.mxu2 }
  0xe2   : > { %v665_v16 = vpop.f32.mrf.mxu3  ;;  %v617_v32 = vadd.f32 %v2431_v48, %v616_v14  ;;  %1102 = vmatpush.bf16.msrb.mxu1 %v1675_v52  ;;  %v1622_v52 = vld [vmem:[#allocation10] sm:$0xf] }
  0xe3   : > { %v598_v53 = vpop.f32.mrf.mxu0 }
  0xe4   : > { %v647_v54 = vpop.f32.mrf.mxu1  ;;  %v599_v55 = vadd.f32 %v2431_v48, %v598_v53  ;;  %v666_v37 = vadd.f32 %v665_v16, %v617_v32 }
  0xe6   : > { %v648_v56 = vadd.f32 %v647_v54, %v599_v55  ;;  %v1855_v59 = vpop.eup %1854 }
  0xe8   : > { %1856 = vtanh.f32 %v648_v56 }
  0xe9   : > { %v618_v23 = vpop.f32.mrf.mxu2 }
  0xea   : > { %v667_v26 = vpop.f32.mrf.mxu3  ;;  %v619_v35 = vadd.f32 %v2431_v48, %v618_v23 }
  0xeb   : > { %v601_v57 = vpop.f32.mrf.mxu0 }
  0xec   : > { %v650_v58 = vpop.f32.mrf.mxu1  ;;  %v602_v61 = vadd.f32 %v2431_v48, %v601_v57  ;;  %v668_v41 = vadd.f32 %v667_v26, %v619_v35  ;;  %v1638_v26 = vld [vmem:[#allocation10 + $0x20] sm:$0xf] }
  0xee   : > { %v1857_v60 = vpop.eup %1856  ;;  %v651_v63 = vadd.f32 %v650_v58, %v602_v61 }
  0xef   : > { %v701_v62 = vpack.c.bf16 %v1857_v60, %v1855_v59 }
  0xf0   : > { %1858 = vtanh.f32 %v651_v63  ;;  %v1735_v63 = vld [vmem:[#allocation10 + $0x54] sm:$0xf0] }
  0xf1   : > { %819 = vmatmul.bf16.vlgmr.msrb.gmra.mxu2 %v701_v62  ;;  %868 = vmatmul.bf16.vlgmr.msrb.gmra.mxu3 %v701_v62  ;;  %v621_v30 = vpop.f32.mrf.mxu2  ;;  %v1662_v62 = vld [vmem:[#allocation10 + $0x50] sm:$0xf] }
  0xf2   : > { %v670_v33 = vpop.f32.mrf.mxu3  ;;  %v622_v56 = vadd.f32 %v2431_v48, %v621_v30  ;;  %v1640_v30 = vld [vmem:[#allocation10 + $0x28] sm:$0xf0] }
  0xf3   : > { %v603_v0 = vpop.f32.mrf.mxu0 }
  0xf4   : > { %v652_v1 = vpop.f32.mrf.mxu1  ;;  %v604_v2 = vadd.f32 %v2431_v48, %v603_v0  ;;  %v671_v60 = vadd.f32 %v670_v33, %v622_v56  ;;  %v1734_v0 = vld [vmem:[#allocation10 + $0x54] sm:$0xf]  ;;  %v1624_v56 = vld [vmem:[#allocation10 + $0x8] sm:$0xf0] }
  0xf6   : > { %v653_v3 = vadd.f32 %v652_v1, %v604_v2  ;;  %v1859_v6 = vpop.eup %1858  ;;  %v1663_v2 = vor.u32 %v1735_v63, %v1662_v62 }
  0xf8   : > { %1860 = vtanh.f32 %v653_v3  ;;  %v1664_v3 = vld [vmem:[#allocation10 + $0x58] sm:$0xf0]  ;;  %1054 = vmatpush.bf16.msrb.mxu0 %v1663_v2 }
  0xf9   : > { %v623_v46 = vpop.f32.mrf.mxu2 }
  0xfa   : > { %v672_v53 = vpop.f32.mrf.mxu3  ;;  %v624_v58 = vadd.f32 %v2431_v48, %v623_v46  ;;  %v1631_v46 = vor.u32 %v1727_v44, %v1630_v43 }
  0xfb   : > { %v606_v4 = vpop.f32.mrf.mxu0 }
  0xfc   : > { %v655_v5 = vpop.f32.mrf.mxu1  ;;  %v607_v8 = vadd.f32 %v2431_v48, %v606_v4  ;;  %v673_v1 = vadd.f32 %v672_v53, %v624_v58  ;;  %v1654_v4 = vld [vmem:[#allocation10 + $0x40] sm:$0xf]  ;;  %v1725_v53 = vld [vmem:[#allocation10 + $0x4] sm:$0xf0]  ;;  %v725_v58 = vld [vmem:[%s2639_s4] sm:$0x3] }
  0xfd   : > { %v2461_v63 = vperm.slane %v725_v58, 1 }
  0xfe   : > { %v1861_v7 = vpop.eup %1860  ;;  %v656_v10 = vadd.f32 %v655_v5, %v607_v8  ;;  %v1733_v5 = vld [vmem:[#allocation10 + $0x44] sm:$0xf0]  ;;  %v1656_v8 = vld [vmem:[#allocation10 + $0x48] sm:$0xf0] }
  0xff   : > { %v702_v9 = vpack.c.bf16 %v1861_v7, %v1859_v6  ;;  %v1667_v6 = vor.u32 %v1734_v0, %v1664_v3  ;;  %v1732_v7 = vld [vmem:[#allocation10 + $0x44] sm:$0xf] }
 0x100   : > { %1862 = vtanh.f32 %v656_v10  ;;  %v1659_v10 = vor.u32 %v1732_v7, %v1656_v8 }
 0x101   : > { %824 = vmatmul.bf16.gmra.mxu2 %v702_v9  ;;  %873 = vmatmul.bf16.gmra.mxu3 %v702_v9  ;;  %v626_v57 = vpop.f32.mrf.mxu2  ;;  %v1655_v9 = vor.u32 %v1733_v5, %v1654_v4 }
 0x102   : > { %v675_v61 = vpop.f32.mrf.mxu3  ;;  %1103 = vmatpush.bf16.msrb.mxu1 %v1667_v6 }
 0x103   : > { %v608_v11 = vpop.f32.mrf.mxu0  ;;  %1055 = vmatpush.bf16.msrb.mxu0 %v1655_v9 }
 0x104   : > { %v657_v12 = vpop.f32.mrf.mxu1  ;;  %v609_v13 = vadd.f32 %v2431_v48, %v608_v11 }
 0x106   : > { %v658_v15 = vadd.f32 %v657_v12, %v609_v13  ;;  %v1863_v19 = vpop.eup %1862  ;;  %1104 = vmatpush.bf16.msrb.mxu1 %v1659_v10 }
 0x108   : > { %1864 = vtanh.f32 %v658_v15  ;;  %v627_v15 = vadd.f32 %v2431_v48, %v626_v57 }
 0x109   : > { %v628_v11 = vpop.f32.mrf.mxu2 }
 0x10a   : > { %v677_v13 = vpop.f32.mrf.mxu3  ;;  %v629_v16 = vadd.f32 %v2431_v48, %v628_v11 }
 0x10b   : > { %v611_v17 = vpop.f32.mrf.mxu0 }
 0x10c   : > { %v660_v18 = vpop.f32.mrf.mxu1  ;;  %v612_v21 = vadd.f32 %v2431_v48, %v611_v17  ;;  %v678_v23 = vadd.f32 %v677_v13, %v629_v16 }
 0x10e   : > { %v1865_v20 = vpop.eup %1864  ;;  %v661_v24 = vadd.f32 %v660_v18, %v612_v21  ;;  %v676_v18 = vadd.f32 %v675_v61, %v627_v15  ;;  %v1731_v21 = vld [vmem:[#allocation10 + $0x34] sm:$0xf0] }
 0x10f   : > { %v703_v22 = vpack.c.bf16 %v1865_v20, %v1863_v19  ;;  %v1646_v20 = vld [vmem:[#allocation10 + $0x30] sm:$0xf] }
 0x110   : > { %1866 = vtanh.f32 %v661_v24  ;;  %v1647_v24 = vor.u32 %v1731_v21, %v1646_v20 }
 0x111   : > { %829 = vmatmul.bf16.gmra.mxu2 %v703_v22  ;;  %878 = vmatmul.bf16.gmra.mxu3 %v703_v22  ;;  %v631_v19 = vpop.f32.mrf.mxu2  ;;  %v1730_v22 = vld [vmem:[#allocation10 + $0x34] sm:$0xf] }
 0x112   : > { %1056 = vmatpush.bf16.msrb.mxu0 %v1647_v24  ;;  %v680_v32 = vpop.f32.mrf.mxu3 }
 0x113   : > { %v613_v25 = vpop.f32.mrf.mxu0 }
 0x114   : > { %v614_v27 = vadd.f32 %v2431_v48, %v613_v25  ;;  %v662_v28 = vpop.f32.mrf.mxu1  ;;  %v1648_v25 = vld [vmem:[#allocation10 + $0x38] sm:$0xf0] }
 0x116   : > { %v663_v29 = vadd.f32 %v662_v28, %v614_v27  ;;  %v1867_v31 = vpop.eup %1866  ;;  %v1729_v27 = vld [vmem:[#allocation10 + $0x24] sm:$0xf0]  ;;  %v1651_v28 = vor.u32 %v1730_v22, %v1648_v25 }
 0x118   : > { %1868 = vtanh.f32 %v663_v29  ;;  %v1728_v29 = vld [vmem:[#allocation10 + $0x24] sm:$0xf]  ;;  %1105 = vmatpush.bf16.msrb.mxu1 %v1651_v28 }
 0x119   : > { %1870 = vtanh.f32 %v666_v37  ;;  %v1643_v33 = vor.u32 %v1728_v29, %v1640_v30  ;;  %v633_v35 = vpop.f32.mrf.mxu2  ;;  %v632_v37 = vadd.f32 %v2431_v48, %v631_v19 }
 0x11a   : > { %1872 = vtanh.f32 %v668_v41  ;;  %v634_v38 = vadd.f32 %v2431_v48, %v633_v35  ;;  %v682_v39 = vpop.f32.mrf.mxu3 }
 0x11b   : > { %1874 = vtanh.f32 %v671_v60  ;;  %v681_v41 = vadd.f32 %v680_v32, %v632_v37 }
 0x11c   : > { %1876 = vtanh.f32 %v673_v1  ;;  %1106 = vmatpush.bf16.msrb.mxu1 %v1643_v33  ;;  %v683_v42 = vadd.f32 %v682_v39, %v634_v38 }
 0x11d   : > { %1878 = vtanh.f32 %v676_v18 }
 0x11e   : > { %v1869_v34 = vpop.eup %1868  ;;  %1880 = vtanh.f32 %v678_v23 }
 0x11f   : > { %v704_v36 = vpack.c.bf16 %v1869_v34, %v1867_v31  ;;  %v1871_v54 = vpop.eup %1870  ;;  %v1639_v31 = vor.u32 %v1729_v27, %v1638_v26  ;;  %1882 = vtanh.f32 %v681_v41 }
 0x120   : > { %v1873_v55 = vpop.eup %1872  ;;  %1884 = vtanh.f32 %v683_v42  ;;  %1107 = vmatpush.bf16.msrb.mxu1 %v1635_v49 }
 0x121   : > { %834 = vmatmul.bf16.gmra.mxu2 %v704_v36  ;;  %883 = vmatmul.bf16.gmra.mxu3 %v704_v36  ;;  %v705_v59 = vpack.c.bf16 %v1873_v55, %v1871_v54  ;;  %v1875_v12 = vpop.eup %1874  ;;  %v1724_v54 = vld [vmem:[#allocation10 + $0x4] sm:$0xf]  ;;  %v1623_v55 = vor.u32 %v1725_v53, %v1622_v52 }
 0x122   : > { %v1877_v14 = vpop.eup %1876  ;;  %1057 = vmatpush.bf16.msrb.mxu0 %v1639_v31  ;;  %v1627_v57 = vor.u32 %v1724_v54, %v1624_v56 }
 0x123   : > { %v706_v17 = vpack.c.bf16 %v1877_v14, %v1875_v12  ;;  %v1879_v34 = vpop.eup %1878 }
 0x124   : > { %v1881_v36 = vpop.eup %1880  ;;  %1108 = vmatpush.bf16.msrb.mxu1 %v1627_v57 }
 0x125   : > { %v707_v40 = vpack.c.bf16 %v1881_v36, %v1879_v34  ;;  %v1883_v50 = vpop.eup %1882 }
 0x126   : > { %1058 = vmatpush.bf16.msrb.mxu0 %v1631_v46  ;;  %v1885_v51 = vpop.eup %1884 }
 0x127   : > { %v708_v48 = vpack.c.bf16 %v1885_v51, %v1883_v50 }
 0x12a   : > { %1059 = vmatpush.bf16.msrb.mxu0 %v1623_v55 }
 0x131   : > { %839 = vmatmul.bf16.gmra.mxu2 %v705_v59  ;;  %888 = vmatmul.bf16.gmra.mxu3 %v705_v59  ;;  %v2453_v59 = vperm.slane %v725_v58, 0 }
 0x141   : > { %844 = vmatmul.bf16.gmra.mxu2 %v706_v17  ;;  %893 = vmatmul.bf16.gmra.mxu3 %v706_v17 }
 0x151   : > { %849 = vmatmul.bf16.gmra.mxu2 %v707_v40  ;;  %898 = vmatmul.bf16.gmra.mxu3 %v707_v40 }
 0x161   : > { %854 = vmatmul.bf16.gmra.mxu2 %v708_v48  ;;  %903 = vmatmul.bf16.gmra.mxu3 %v708_v48 }
 0x174   : > { %v820_v60 = vpop.f32.mrf.mxu2  ;;  %v869_v61 = vpop.f32.mrf.mxu3 }
 0x175   : > { %v821_v62 = vadd.f32 %v820_v60, %v2453_v59  ;;  %v870_v0 = vadd.f32 %v869_v61, %v2461_v63 }
 0x177   : > { %910 = vst.msk [vmem:[%s2458_s13] sm:$0xff] %vm909_vm0, %v821_v62  ;;  %1886 = vtanh.f32 %v870_v0 }
 0x17c   : > { %v822_v1 = vpop.f32.mrf.mxu2  ;;  %v871_v2 = vpop.f32.mrf.mxu3 }
 0x17d   : > { %v823_v3 = vadd.f32 %v822_v1, %v2453_v59  ;;  %v872_v4 = vadd.f32 %v871_v2, %v2461_v63  ;;  %v1887_v5 = vpop.eup %1886 }
 0x17f   : > { %911 = vst.msk [vmem:[%s2458_s13 + $0x8] sm:$0xff] %vm909_vm0, %v823_v3  ;;  %1888 = vtanh.f32 %v872_v4 }
 0x184   : > { %v825_v6 = vpop.f32.mrf.mxu2  ;;  %v874_v7 = vpop.f32.mrf.mxu3 }
 0x185   : > { %v1889_v8 = vpop.eup %1888  ;;  %v826_v9 = vadd.f32 %v825_v6, %v2453_v59  ;;  %v875_v11 = vadd.f32 %v874_v7, %v2461_v63 }
 0x186   : > { %v942_v10 = vpack.c.bf16 %v1889_v8, %v1887_v5 }
 0x187   : > { %912 = vst.msk [vmem:[%s2458_s13 + $0x10] sm:$0xff] %vm909_vm0, %v826_v9  ;;  %1890 = vtanh.f32 %v875_v11 }
 0x188   : > { %1060 = vmatmul.bf16.vlgmr.msrb.gmra.mxu0 %v942_v10  ;;  %1109 = vmatmul.bf16.vlgmr.msrb.gmra.mxu1 %v942_v10 }
 0x18c   : > { %v827_v12 = vpop.f32.mrf.mxu2  ;;  %v876_v13 = vpop.f32.mrf.mxu3 }
 0x18d   : > { %v828_v14 = vadd.f32 %v827_v12, %v2453_v59  ;;  %v877_v15 = vadd.f32 %v876_v13, %v2461_v63  ;;  %v1891_v16 = vpop.eup %1890 }
 0x18f   : > { %913 = vst.msk [vmem:[%s2458_s13 + $0x18] sm:$0xff] %vm909_vm0, %v828_v14  ;;  %1892 = vtanh.f32 %v877_v15 }
 0x194   : > { %v830_v17 = vpop.f32.mrf.mxu2  ;;  %v879_v18 = vpop.f32.mrf.mxu3 }
 0x195   : > { %v1893_v19 = vpop.eup %1892  ;;  %v831_v20 = vadd.f32 %v830_v17, %v2453_v59  ;;  %v880_v22 = vadd.f32 %v879_v18, %v2461_v63 }
 0x196   : > { %v943_v21 = vpack.c.bf16 %v1893_v19, %v1891_v16 }
 0x197   : > { %914 = vst.msk [vmem:[%s2458_s13 + $0x20] sm:$0xff] %vm909_vm0, %v831_v20  ;;  %1894 = vtanh.f32 %v880_v22 }
 0x198   : > { %1065 = vmatmul.bf16.gmra.mxu0 %v943_v21  ;;  %1114 = vmatmul.bf16.gmra.mxu1 %v943_v21 }
 0x19c   : > { %v832_v23 = vpop.f32.mrf.mxu2  ;;  %v881_v24 = vpop.f32.mrf.mxu3 }
 0x19d   : > { %v833_v25 = vadd.f32 %v832_v23, %v2453_v59  ;;  %v882_v26 = vadd.f32 %v881_v24, %v2461_v63  ;;  %v1895_v27 = vpop.eup %1894  ;;  %v966_v23 = vld [vmem:[%s2641_s6] sm:$0x3] }
 0x19e   : > { %v2529_v24 = vperm.slane %v966_v23, 0 }
 0x19f   : > { %915 = vst.msk [vmem:[%s2458_s13 + $0x28] sm:$0xff] %vm909_vm0, %v833_v25  ;;  %1896 = vtanh.f32 %v882_v26  ;;  %v2531_v25 = vperm.slane %v966_v23, 1 }
 0x1a4   : > { %v835_v28 = vpop.f32.mrf.mxu2  ;;  %v884_v29 = vpop.f32.mrf.mxu3 }
 0x1a5   : > { %v1897_v30 = vpop.eup %1896  ;;  %v836_v31 = vadd.f32 %v835_v28, %v2453_v59  ;;  %v885_v33 = vadd.f32 %v884_v29, %v2461_v63 }
 0x1a6   : > { %v944_v32 = vpack.c.bf16 %v1897_v30, %v1895_v27 }
 0x1a7   : > { %916 = vst.msk [vmem:[%s2458_s13 + $0x30] sm:$0xff] %vm909_vm0, %v836_v31  ;;  %1898 = vtanh.f32 %v885_v33 }
 0x1a8   : > { %1070 = vmatmul.bf16.gmra.mxu0 %v944_v32  ;;  %1119 = vmatmul.bf16.gmra.mxu1 %v944_v32 }
 0x1ac   : > { %v837_v34 = vpop.f32.mrf.mxu2  ;;  %v886_v35 = vpop.f32.mrf.mxu3 }
 0x1ad   : > { %v838_v36 = vadd.f32 %v837_v34, %v2453_v59  ;;  %v887_v37 = vadd.f32 %v886_v35, %v2461_v63  ;;  %v1899_v38 = vpop.eup %1898 }
 0x1af   : > { %917 = vst.msk [vmem:[%s2458_s13 + $0x38] sm:$0xff] %vm909_vm0, %v838_v36  ;;  %1900 = vtanh.f32 %v887_v37 }
 0x1b4   : > { %v840_v39 = vpop.f32.mrf.mxu2  ;;  %v889_v40 = vpop.f32.mrf.mxu3 }
 0x1b5   : > { %v1901_v41 = vpop.eup %1900  ;;  %v841_v42 = vadd.f32 %v840_v39, %v2453_v59  ;;  %v890_v44 = vadd.f32 %v889_v40, %v2461_v63 }
 0x1b6   : > { %v945_v43 = vpack.c.bf16 %v1901_v41, %v1899_v38 }
 0x1b7   : > { %918 = vst.msk [vmem:[%s2458_s13 + $0x40] sm:$0xff] %vm909_vm0, %v841_v42  ;;  %1902 = vtanh.f32 %v890_v44 }
 0x1b8   : > { %1075 = vmatmul.bf16.gmra.mxu0 %v945_v43  ;;  %1124 = vmatmul.bf16.gmra.mxu1 %v945_v43 }
 0x1bc   : > { %v842_v45 = vpop.f32.mrf.mxu2  ;;  %v891_v46 = vpop.f32.mrf.mxu3 }
 0x1bd   : > { %v843_v47 = vadd.f32 %v842_v45, %v2453_v59  ;;  %v892_v49 = vadd.f32 %v891_v46, %v2461_v63  ;;  %v1903_v50 = vpop.eup %1902 }
 0x1bf   : > { %919 = vst.msk [vmem:[%s2458_s13 + $0x48] sm:$0xff] %vm909_vm0, %v843_v47  ;;  %1904 = vtanh.f32 %v892_v49 }
 0x1c4   : > { %v845_v51 = vpop.f32.mrf.mxu2  ;;  %v894_v48 = vpop.f32.mrf.mxu3 }
 0x1c5   : > { %v1905_v52 = vpop.eup %1904  ;;  %v846_v53 = vadd.f32 %v845_v51, %v2453_v59  ;;  %v895_v55 = vadd.f32 %v894_v48, %v2461_v63 }
 0x1c6   : > { %v946_v54 = vpack.c.bf16 %v1905_v52, %v1903_v50 }
 0x1c7   : > { %920 = vst.msk [vmem:[%s2458_s13 + $0x50] sm:$0xff] %vm909_vm0, %v846_v53  ;;  %1906 = vtanh.f32 %v895_v55 }
 0x1c8   : > { %1080 = vmatmul.bf16.gmra.mxu0 %v946_v54  ;;  %1129 = vmatmul.bf16.gmra.mxu1 %v946_v54 }
 0x1cc   : > { %v847_v56 = vpop.f32.mrf.mxu2  ;;  %v896_v57 = vpop.f32.mrf.mxu3 }
 0x1cd   : > { %v848_v58 = vadd.f32 %v847_v56, %v2453_v59  ;;  %v897_v60 = vadd.f32 %v896_v57, %v2461_v63  ;;  %v1907_v61 = vpop.eup %1906 }
 0x1cf   : > { %921 = vst.msk [vmem:[%s2458_s13 + $0x58] sm:$0xff] %vm909_vm0, %v848_v58  ;;  %1908 = vtanh.f32 %v897_v60 }
 0x1d4   : > { %v850_v62 = vpop.f32.mrf.mxu2  ;;  %v899_v0 = vpop.f32.mrf.mxu3 }
 0x1d5   : > { %v1909_v1 = vpop.eup %1908  ;;  %v851_v2 = vadd.f32 %v850_v62, %v2453_v59  ;;  %v900_v4 = vadd.f32 %v899_v0, %v2461_v63 }
 0x1d6   : > { %v947_v3 = vpack.c.bf16 %v1909_v1, %v1907_v61 }
 0x1d7   : > { %922 = vst.msk [vmem:[%s2458_s13 + $0x60] sm:$0xff] %vm909_vm0, %v851_v2  ;;  %1910 = vtanh.f32 %v900_v4 }
 0x1d8   : > { %1085 = vmatmul.bf16.gmra.mxu0 %v947_v3  ;;  %1134 = vmatmul.bf16.gmra.mxu1 %v947_v3 }
 0x1dc   : > { %v852_v5 = vpop.f32.mrf.mxu2  ;;  %v901_v6 = vpop.f32.mrf.mxu3 }
 0x1dd   : > { %v853_v7 = vadd.f32 %v852_v5, %v2453_v59  ;;  %v902_v8 = vadd.f32 %v901_v6, %v2461_v63  ;;  %v1911_v9 = vpop.eup %1910 }
 0x1df   : > { %923 = vst.msk [vmem:[%s2458_s13 + $0x68] sm:$0xff] %vm909_vm0, %v853_v7  ;;  %1912 = vtanh.f32 %v902_v8 }
 0x1e4   : > { %v855_v10 = vpop.f32.mrf.mxu2  ;;  %v904_v11 = vpop.f32.mrf.mxu3 }
 0x1e5   : > { %v1913_v12 = vpop.eup %1912  ;;  %v856_v13 = vadd.f32 %v855_v10, %v2453_v59  ;;  %v905_v15 = vadd.f32 %v904_v11, %v2461_v63 }
 0x1e6   : > { %v948_v14 = vpack.c.bf16 %v1913_v12, %v1911_v9 }
 0x1e7   : > { %924 = vst.msk [vmem:[%s2458_s13 + $0x70] sm:$0xff] %vm909_vm0, %v856_v13  ;;  %1914 = vtanh.f32 %v905_v15 }
 0x1e8   : > { %1090 = vmatmul.bf16.gmra.mxu0 %v948_v14  ;;  %1139 = vmatmul.bf16.gmra.mxu1 %v948_v14 }
 0x1ec   : > { %v857_v16 = vpop.f32.mrf.mxu2  ;;  %v906_v17 = vpop.f32.mrf.mxu3 }
 0x1ed   : > { %v858_v18 = vadd.f32 %v857_v16, %v2453_v59  ;;  %v907_v19 = vadd.f32 %v906_v17, %v2461_v63  ;;  %v1915_v20 = vpop.eup %1914 }
 0x1ef   : > { %925 = vst.msk [vmem:[%s2458_s13 + $0x78] sm:$0xff] %vm909_vm0, %v858_v18  ;;  %1916 = vtanh.f32 %v907_v19  ;;  %s2152_s13 = scalar_lea.hbm %s2643_s8, 512 }
 0x1f0   : > { %p2154_p9 = scmp.lt.s32.totalorder %s2152_s13, %s2148_s25 }
 0x1f2   : > { %p2155_p10 = por %p2154_p9, %p2153_p2 }
 0x1f4   : > { %p2156_p12 = pnand %p2155_p10, %p2151_p11 }
 0x1f5   : > { %v1917_v21 = vpop.eup %1916 }
 0x1f6   : > { %v949_v22 = vpack.c.bf16 %v1917_v21, %v1915_v20 }
 0x1f8   : > { %1095 = vmatmul.bf16.gmra.mxu0 %v949_v22  ;;  %1144 = vmatmul.bf16.gmra.mxu1 %v949_v22 }
 0x205   : > { %v1061_v59 = vpop.f32.mrf.mxu0  ;;  %v1110_v26 = vpop.f32.mrf.mxu1 }
 0x206   : > { %v1062_v63 = vadd.f32 %v1061_v59, %v2529_v24  ;;  %v1111_v27 = vadd.f32 %v1110_v26, %v2531_v25 }
 0x208   : > { %v1150_v28 = vmul.f32 0.5, %v1062_v63  ;;  %v1151_v29 = vmul.f32 0.5, %v1111_v27 }
 0x20a   : > { %1918 = vtanh.f32 %v1150_v28 }
 0x20b   : > { %1920 = vtanh.f32 %v1151_v29 }
 0x20d   : > { %v1063_v30 = vpop.f32.mrf.mxu0  ;;  %v1112_v31 = vpop.f32.mrf.mxu1 }
 0x20e   : > { %v1064_v32 = vadd.f32 %v1063_v30, %v2529_v24  ;;  %v1113_v33 = vadd.f32 %v1112_v31, %v2531_v25 }
 0x210   : > { %v1919_v34 = vpop.eup %1918  ;;  %v1152_v35 = vmul.f32 0.5, %v1064_v32  ;;  %v1153_v36 = vmul.f32 0.5, %v1113_v33 }
 0x211   : > { %v1921_v37 = vpop.eup %1920  ;;  %v1214_v38 = vadd.f32 1.0, %v1919_v34 }
 0x212   : > { %v1215_v39 = vadd.f32 1.0, %v1921_v37  ;;  %1922 = vtanh.f32 %v1152_v35 }
 0x213   : > { %v1246_v40 = vmul.f32 0.5, %v1214_v38  ;;  %1924 = vtanh.f32 %v1153_v36 }
 0x214   : > { %v1247_v41 = vmul.f32 0.5, %v1215_v39 }
 0x215   : > { %1278 = vst [vmem:[%s2539_s18] sm:$0xff] %v1246_v40  ;;  %v1066_v42 = vpop.f32.mrf.mxu0  ;;  %v1115_v43 = vpop.f32.mrf.mxu1 }
 0x216   : > { %1279 = vst [vmem:[%s2539_s18 + $0x8] sm:$0xff] %v1247_v41  ;;  %v1067_v44 = vadd.f32 %v1066_v42, %v2529_v24  ;;  %v1116_v45 = vadd.f32 %v1115_v43, %v2531_v25 }
 0x218   : > { %v1923_v46 = vpop.eup %1922  ;;  %v1154_v47 = vmul.f32 0.5, %v1067_v44  ;;  %v1155_v49 = vmul.f32 0.5, %v1116_v45 }
 0x219   : > { %v1925_v50 = vpop.eup %1924  ;;  %v1216_v51 = vadd.f32 1.0, %v1923_v46 }
 0x21a   : > { %v1217_v48 = vadd.f32 1.0, %v1925_v50  ;;  %1926 = vtanh.f32 %v1154_v47 }
 0x21b   : > { %v1248_v52 = vmul.f32 0.5, %v1216_v51  ;;  %1928 = vtanh.f32 %v1155_v49 }
 0x21c   : > { %v1249_v53 = vmul.f32 0.5, %v1217_v48 }
 0x21d   : > { %1280 = vst [vmem:[%s2539_s18 + $0x10] sm:$0xff] %v1248_v52  ;;  %v1068_v54 = vpop.f32.mrf.mxu0  ;;  %v1117_v55 = vpop.f32.mrf.mxu1 }
 0x21e   : > { %1281 = vst [vmem:[%s2539_s18 + $0x18] sm:$0xff] %v1249_v53  ;;  %v1069_v56 = vadd.f32 %v1068_v54, %v2529_v24  ;;  %v1118_v57 = vadd.f32 %v1117_v55, %v2531_v25 }
 0x220   : > { %v1927_v58 = vpop.eup %1926  ;;  %v1156_v60 = vmul.f32 0.5, %v1069_v56  ;;  %v1157_v61 = vmul.f32 0.5, %v1118_v57 }
 0x221   : > { %v1929_v62 = vpop.eup %1928  ;;  %v1218_v0 = vadd.f32 1.0, %v1927_v58 }
 0x222   : > { %v1219_v1 = vadd.f32 1.0, %v1929_v62  ;;  %1930 = vtanh.f32 %v1156_v60 }
 0x223   : > { %v1250_v2 = vmul.f32 0.5, %v1218_v0  ;;  %1932 = vtanh.f32 %v1157_v61 }
 0x224   : > { %v1251_v3 = vmul.f32 0.5, %v1219_v1 }
 0x225   : > { %1282 = vst [vmem:[%s2539_s18 + $0x20] sm:$0xff] %v1250_v2  ;;  %v1071_v4 = vpop.f32.mrf.mxu0  ;;  %v1120_v5 = vpop.f32.mrf.mxu1 }
 0x226   : > { %1283 = vst [vmem:[%s2539_s18 + $0x28] sm:$0xff] %v1251_v3  ;;  %v1072_v6 = vadd.f32 %v1071_v4, %v2529_v24  ;;  %v1121_v7 = vadd.f32 %v1120_v5, %v2531_v25 }
 0x228   : > { %v1931_v8 = vpop.eup %1930  ;;  %v1158_v9 = vmul.f32 0.5, %v1072_v6  ;;  %v1159_v10 = vmul.f32 0.5, %v1121_v7 }
 0x229   : > { %v1933_v11 = vpop.eup %1932  ;;  %v1220_v12 = vadd.f32 1.0, %v1931_v8 }
 0x22a   : > { %v1221_v13 = vadd.f32 1.0, %v1933_v11  ;;  %1934 = vtanh.f32 %v1158_v9 }
 0x22b   : > { %v1252_v14 = vmul.f32 0.5, %v1220_v12  ;;  %1936 = vtanh.f32 %v1159_v10 }
 0x22c   : > { %v1253_v15 = vmul.f32 0.5, %v1221_v13 }
 0x22d   : > { %1284 = vst [vmem:[%s2539_s18 + $0x30] sm:$0xff] %v1252_v14  ;;  %v1073_v16 = vpop.f32.mrf.mxu0  ;;  %v1122_v17 = vpop.f32.mrf.mxu1 }
 0x22e   : > { %1285 = vst [vmem:[%s2539_s18 + $0x38] sm:$0xff] %v1253_v15  ;;  %v1074_v18 = vadd.f32 %v1073_v16, %v2529_v24  ;;  %v1123_v19 = vadd.f32 %v1122_v17, %v2531_v25 }
 0x230   : > { %v1935_v20 = vpop.eup %1934  ;;  %v1160_v21 = vmul.f32 0.5, %v1074_v18  ;;  %v1161_v22 = vmul.f32 0.5, %v1123_v19 }
 0x231   : > { %v1937_v23 = vpop.eup %1936  ;;  %v1222_v59 = vadd.f32 1.0, %v1935_v20 }
 0x232   : > { %v1223_v26 = vadd.f32 1.0, %v1937_v23  ;;  %1938 = vtanh.f32 %v1160_v21 }
 0x233   : > { %v1254_v63 = vmul.f32 0.5, %v1222_v59  ;;  %1940 = vtanh.f32 %v1161_v22 }
 0x234   : > { %v1255_v27 = vmul.f32 0.5, %v1223_v26 }
 0x235   : > { %1286 = vst [vmem:[%s2539_s18 + $0x40] sm:$0xff] %v1254_v63  ;;  %v1076_v28 = vpop.f32.mrf.mxu0  ;;  %v1125_v29 = vpop.f32.mrf.mxu1 }
 0x236   : > { %1287 = vst [vmem:[%s2539_s18 + $0x48] sm:$0xff] %v1255_v27  ;;  %v1077_v30 = vadd.f32 %v1076_v28, %v2529_v24  ;;  %v1126_v31 = vadd.f32 %v1125_v29, %v2531_v25 }
 0x238   : > { %v1939_v32 = vpop.eup %1938  ;;  %v1162_v33 = vmul.f32 0.5, %v1077_v30  ;;  %v1163_v34 = vmul.f32 0.5, %v1126_v31 }
 0x239   : > { %v1941_v35 = vpop.eup %1940  ;;  %v1224_v36 = vadd.f32 1.0, %v1939_v32 }
 0x23a   : > { %v1225_v37 = vadd.f32 1.0, %v1941_v35  ;;  %1942 = vtanh.f32 %v1162_v33 }
 0x23b   : > { %v1256_v38 = vmul.f32 0.5, %v1224_v36  ;;  %1944 = vtanh.f32 %v1163_v34 }
 0x23c   : > { %v1257_v39 = vmul.f32 0.5, %v1225_v37 }
 0x23d   : > { %1288 = vst [vmem:[%s2539_s18 + $0x50] sm:$0xff] %v1256_v38  ;;  %v1078_v40 = vpop.f32.mrf.mxu0  ;;  %v1127_v41 = vpop.f32.mrf.mxu1 }
 0x23e   : > { %1289 = vst [vmem:[%s2539_s18 + $0x58] sm:$0xff] %v1257_v39  ;;  %v1079_v42 = vadd.f32 %v1078_v40, %v2529_v24  ;;  %v1128_v43 = vadd.f32 %v1127_v41, %v2531_v25 }
 0x240   : > { %v1943_v44 = vpop.eup %1942  ;;  %v1164_v45 = vmul.f32 0.5, %v1079_v42  ;;  %v1165_v46 = vmul.f32 0.5, %v1128_v43 }
 0x241   : > { %v1945_v47 = vpop.eup %1944  ;;  %v1226_v49 = vadd.f32 1.0, %v1943_v44 }
 0x242   : > { %v1227_v50 = vadd.f32 1.0, %v1945_v47  ;;  %1946 = vtanh.f32 %v1164_v45 }
 0x243   : > { %v1258_v51 = vmul.f32 0.5, %v1226_v49  ;;  %1948 = vtanh.f32 %v1165_v46 }
 0x244   : > { %v1259_v48 = vmul.f32 0.5, %v1227_v50 }
 0x245   : > { %1290 = vst [vmem:[%s2539_s18 + $0x60] sm:$0xff] %v1258_v51  ;;  %v1081_v52 = vpop.f32.mrf.mxu0  ;;  %v1130_v53 = vpop.f32.mrf.mxu1 }
 0x246   : > { %1291 = vst [vmem:[%s2539_s18 + $0x68] sm:$0xff] %v1259_v48  ;;  %v1082_v54 = vadd.f32 %v1081_v52, %v2529_v24  ;;  %v1131_v55 = vadd.f32 %v1130_v53, %v2531_v25 }
 0x248   : > { %v1947_v56 = vpop.eup %1946  ;;  %v1166_v57 = vmul.f32 0.5, %v1082_v54  ;;  %v1167_v58 = vmul.f32 0.5, %v1131_v55 }
 0x249   : > { %v1949_v60 = vpop.eup %1948  ;;  %v1228_v61 = vadd.f32 1.0, %v1947_v56 }
 0x24a   : > { %v1229_v62 = vadd.f32 1.0, %v1949_v60  ;;  %1950 = vtanh.f32 %v1166_v57 }
 0x24b   : > { %v1260_v0 = vmul.f32 0.5, %v1228_v61  ;;  %1952 = vtanh.f32 %v1167_v58 }
 0x24c   : > { %v1261_v1 = vmul.f32 0.5, %v1229_v62 }
 0x24d   : > { %1292 = vst [vmem:[%s2539_s18 + $0x70] sm:$0xff] %v1260_v0  ;;  %v1083_v2 = vpop.f32.mrf.mxu0  ;;  %v1132_v3 = vpop.f32.mrf.mxu1 }
 0x24e   : > { %1293 = vst [vmem:[%s2539_s18 + $0x78] sm:$0xff] %v1261_v1  ;;  %v1084_v4 = vadd.f32 %v1083_v2, %v2529_v24  ;;  %v1133_v5 = vadd.f32 %v1132_v3, %v2531_v25 }
 0x250   : > { %v1951_v6 = vpop.eup %1950  ;;  %v1168_v7 = vmul.f32 0.5, %v1084_v4  ;;  %v1169_v8 = vmul.f32 0.5, %v1133_v5 }
 0x251   : > { %v1953_v9 = vpop.eup %1952  ;;  %v1230_v10 = vadd.f32 1.0, %v1951_v6 }
 0x252   : > { %v1231_v11 = vadd.f32 1.0, %v1953_v9  ;;  %1954 = vtanh.f32 %v1168_v7 }
 0x253   : > { %v1262_v12 = vmul.f32 0.5, %v1230_v10  ;;  %1956 = vtanh.f32 %v1169_v8 }
 0x254   : > { %v1263_v13 = vmul.f32 0.5, %v1231_v11 }
 0x255   : > { %1294 = vst [vmem:[%s2539_s18 + $0x80] sm:$0xff] %v1262_v12  ;;  %v1086_v14 = vpop.f32.mrf.mxu0  ;;  %v1135_v15 = vpop.f32.mrf.mxu1 }
 0x256   : > { %1295 = vst [vmem:[%s2539_s18 + $0x88] sm:$0xff] %v1263_v13  ;;  %v1087_v16 = vadd.f32 %v1086_v14, %v2529_v24  ;;  %v1136_v17 = vadd.f32 %v1135_v15, %v2531_v25 }
 0x258   : > { %v1955_v18 = vpop.eup %1954  ;;  %v1170_v19 = vmul.f32 0.5, %v1087_v16  ;;  %v1171_v20 = vmul.f32 0.5, %v1136_v17 }
 0x259   : > { %v1957_v21 = vpop.eup %1956  ;;  %v1232_v22 = vadd.f32 1.0, %v1955_v18 }
 0x25a   : > { %v1233_v23 = vadd.f32 1.0, %v1957_v21  ;;  %1958 = vtanh.f32 %v1170_v19 }
 0x25b   : > { %v1264_v59 = vmul.f32 0.5, %v1232_v22  ;;  %1960 = vtanh.f32 %v1171_v20 }
 0x25c   : > { %v1265_v26 = vmul.f32 0.5, %v1233_v23 }
 0x25d   : > { %1296 = vst [vmem:[%s2539_s18 + $0x90] sm:$0xff] %v1264_v59  ;;  %v1088_v63 = vpop.f32.mrf.mxu0  ;;  %v1137_v27 = vpop.f32.mrf.mxu1 }
 0x25e   : > { %1297 = vst [vmem:[%s2539_s18 + $0x98] sm:$0xff] %v1265_v26  ;;  %v1089_v28 = vadd.f32 %v1088_v63, %v2529_v24  ;;  %v1138_v29 = vadd.f32 %v1137_v27, %v2531_v25 }
 0x260   : > { %v1959_v30 = vpop.eup %1958  ;;  %v1172_v31 = vmul.f32 0.5, %v1089_v28  ;;  %v1173_v32 = vmul.f32 0.5, %v1138_v29 }
 0x261   : > { %v1961_v33 = vpop.eup %1960  ;;  %v1234_v34 = vadd.f32 1.0, %v1959_v30 }
 0x262   : > { %v1235_v35 = vadd.f32 1.0, %v1961_v33  ;;  %1962 = vtanh.f32 %v1172_v31 }
 0x263   : > { %v1266_v36 = vmul.f32 0.5, %v1234_v34  ;;  %1964 = vtanh.f32 %v1173_v32 }
 0x264   : > { %v1267_v37 = vmul.f32 0.5, %v1235_v35 }
 0x265   : > { %1298 = vst [vmem:[%s2539_s18 + $0xa0] sm:$0xff] %v1266_v36  ;;  %v1091_v38 = vpop.f32.mrf.mxu0  ;;  %v1140_v39 = vpop.f32.mrf.mxu1 }
 0x266   : > { %1299 = vst [vmem:[%s2539_s18 + $0xa8] sm:$0xff] %v1267_v37  ;;  %v1092_v40 = vadd.f32 %v1091_v38, %v2529_v24  ;;  %v1141_v41 = vadd.f32 %v1140_v39, %v2531_v25 }
 0x268   : > { %v1963_v42 = vpop.eup %1962  ;;  %v1174_v43 = vmul.f32 0.5, %v1092_v40  ;;  %v1175_v44 = vmul.f32 0.5, %v1141_v41 }
 0x269   : > { %v1965_v45 = vpop.eup %1964  ;;  %v1236_v46 = vadd.f32 1.0, %v1963_v42 }
 0x26a   : > { %v1237_v47 = vadd.f32 1.0, %v1965_v45  ;;  %1966 = vtanh.f32 %v1174_v43 }
 0x26b   : > { %v1268_v49 = vmul.f32 0.5, %v1236_v46  ;;  %1968 = vtanh.f32 %v1175_v44 }
 0x26c   : > { %v1269_v50 = vmul.f32 0.5, %v1237_v47 }
 0x26d   : > { %1300 = vst [vmem:[%s2539_s18 + $0xb0] sm:$0xff] %v1268_v49  ;;  %v1093_v51 = vpop.f32.mrf.mxu0  ;;  %v1142_v48 = vpop.f32.mrf.mxu1 }
 0x26e   : > { %1301 = vst [vmem:[%s2539_s18 + $0xb8] sm:$0xff] %v1269_v50  ;;  %v1094_v52 = vadd.f32 %v1093_v51, %v2529_v24  ;;  %v1143_v53 = vadd.f32 %v1142_v48, %v2531_v25 }
 0x270   : > { %v1967_v54 = vpop.eup %1966  ;;  %v1176_v55 = vmul.f32 0.5, %v1094_v52  ;;  %v1177_v56 = vmul.f32 0.5, %v1143_v53 }
 0x271   : > { %v1969_v57 = vpop.eup %1968  ;;  %v1238_v58 = vadd.f32 1.0, %v1967_v54 }
 0x272   : > { %v1239_v60 = vadd.f32 1.0, %v1969_v57  ;;  %1970 = vtanh.f32 %v1176_v55 }
 0x273   : > { %v1270_v61 = vmul.f32 0.5, %v1238_v58  ;;  %1972 = vtanh.f32 %v1177_v56 }
 0x274   : > { %v1271_v62 = vmul.f32 0.5, %v1239_v60 }
 0x275   : > { %1302 = vst [vmem:[%s2539_s18 + $0xc0] sm:$0xff] %v1270_v61  ;;  %v1096_v0 = vpop.f32.mrf.mxu0  ;;  %v1145_v1 = vpop.f32.mrf.mxu1 }
 0x276   : > { %1303 = vst [vmem:[%s2539_s18 + $0xc8] sm:$0xff] %v1271_v62  ;;  %v1097_v2 = vadd.f32 %v1096_v0, %v2529_v24  ;;  %v1146_v3 = vadd.f32 %v1145_v1, %v2531_v25 }
 0x278   : > { %v1971_v4 = vpop.eup %1970  ;;  %v1178_v5 = vmul.f32 0.5, %v1097_v2  ;;  %v1179_v6 = vmul.f32 0.5, %v1146_v3 }
 0x279   : > { %v1973_v7 = vpop.eup %1972  ;;  %v1240_v8 = vadd.f32 1.0, %v1971_v4 }
 0x27a   : > { %v1241_v9 = vadd.f32 1.0, %v1973_v7  ;;  %1974 = vtanh.f32 %v1178_v5 }
 0x27b   : > { %v1272_v10 = vmul.f32 0.5, %v1240_v8  ;;  %1976 = vtanh.f32 %v1179_v6 }
 0x27c   : > { %v1273_v11 = vmul.f32 0.5, %v1241_v9 }
 0x27d   : > { %1304 = vst [vmem:[%s2539_s18 + $0xd0] sm:$0xff] %v1272_v10  ;;  %v1098_v12 = vpop.f32.mrf.mxu0  ;;  %v1147_v13 = vpop.f32.mrf.mxu1 }
 0x27e   : > { %1305 = vst [vmem:[%s2539_s18 + $0xd8] sm:$0xff] %v1273_v11  ;;  %v1099_v14 = vadd.f32 %v1098_v12, %v2529_v24  ;;  %v1148_v15 = vadd.f32 %v1147_v13, %v2531_v25 }
 0x280   : > { %v1975_v16 = vpop.eup %1974  ;;  %v1180_v17 = vmul.f32 0.5, %v1099_v14  ;;  %v1181_v18 = vmul.f32 0.5, %v1148_v15 }
 0x281   : > { %v1977_v19 = vpop.eup %1976  ;;  %v1242_v20 = vadd.f32 1.0, %v1975_v16 }
 0x282   : > { %v1243_v21 = vadd.f32 1.0, %v1977_v19  ;;  %1978 = vtanh.f32 %v1180_v17 }
 0x283   : > { %v1274_v22 = vmul.f32 0.5, %v1242_v20  ;;  %1980 = vtanh.f32 %v1181_v18 }
 0x284   : > { %v1275_v23 = vmul.f32 0.5, %v1243_v21 }
 0x285   : > { %1306 = vst [vmem:[%s2539_s18 + $0xe0] sm:$0xff] %v1274_v22 }
 0x286   : > { %1307 = vst [vmem:[%s2539_s18 + $0xe8] sm:$0xff] %v1275_v23 }
 0x288   : > { %v1979_v24 = vpop.eup %1978 }
 0x289   : > { %v1981_v25 = vpop.eup %1980  ;;  %v1244_v59 = vadd.f32 1.0, %v1979_v24 }
 0x28a   : > { %v1245_v26 = vadd.f32 1.0, %v1981_v25 }
 0x28b   : > { %v1276_v63 = vmul.f32 0.5, %v1244_v59 }
 0x28c   : > { %v1277_v27 = vmul.f32 0.5, %v1245_v26 }
 0x28d   : > { %1308 = vst [vmem:[%s2539_s18 + $0xf0] sm:$0xff] %v1276_v63 }
 0x28e   : > { %1309 = vst [vmem:[%s2539_s18 + $0xf8] sm:$0xff] %v1277_v27 }
 0x28f   : > { %2159 = shalt.err (!%p2156_p12)
}
 0x290   : > { %s2218_s10 = smov 256   ;;  %s2219_s18 = smov 16  }
 0x291   : > { %1776 = dma.vmem_to_hbm [thread:$0]  (%p2349_p3), %s1334_s11, 4096, %s1336_s16, %s1316_s9, %s2218_s10, %s2218_s10, %s2219_s18  }
 0x292 PF: > { %s1358_s24 = sand.u32 1, %s2194_s27   ;;  %p2654_p13 = scmp.ge.s32.totalorder %s2206_s30, 2 }
 0x293   : > { %s1359_s1 = scalar_lea.sflag [#allocation4], %s1358_s24 }
 0x294   : > { %p1796_p0 = pnand %p2654_p13, %p2300_p6 }
 0x296   : > { %p1797_p5 = pneg %p1796_p0 }
 0x298   : > { %2189 = dma.done.wait (%p1797_p5), %s1359_s1, 4096  }
 0x299   : > { %2191 = vsyncadd (%p1797_p5), %s1359_s1, 4294963200  ;;  %p24_p7 = scmp.ge.s32.totalorder %s2339_s26, 4   ;;  %s2655_s27 = smov %s2198_s28 }
 0x29a   : > { %s2656_s28 = smov %s2202_s29  ;;  %s2657_s29 = smov %s2355_s20 }
 0x29b   : > { %s2658_s30 = smov %s2339_s26  ;;  %26 = sbr.rel (!%p24_p7) target bundleno = 10 (0xa), region = 121 }
 0x2a0   :  { %1365 = vsyncpa [#allocation3], 1 }
 0x2a1   :  { %1367 = vsyncpa [#allocation3 + $0x1], 1 }
 0x2a2   :  { %1368 = vsyncpa [#allocation6], 1 }
 0x2a3   :  { %1369 = vsyncpa [#allocation9], 1 }
 0x2a4   :  { %1370 = vsyncpa [#allocation4], 1 }
 0x2a5   :  { %1372 = vsyncpa [#allocation4 + $0x1], 1 }

</bundles_post_ra>
